<compile_context>
chip_gen: v5e
topology: v5e:2x2
jax: 0.10.0
libtpu: 0.0.40
codegen_flags: <defaults>
</compile_context>

<pallas_src>
import functools

import jax
import jax.numpy as jnp
from jax.experimental import pallas as pl
from jax.experimental.pallas import tpu as pltpu

FC1_DIMS = 1024
FC2_DIMS = 512
HEAD_PAD = 128  # lane-dense fused head width (>= num_actions + hidden_size)


def _round_up(x, m):
    return (x + m - 1) // m * m


def _choose_tile_b(B):
    if B <= 512:
        # Single grid step; round rows to 16 so bf16 rows fill packed sublanes.
        return _round_up(max(B, 16), 16)
    # Large batch: aim for at least 2 grid steps (keeps both v7x TensorCores
    # busy via the "parallel" axis) while keeping tiles large (<= 1024 rows,
    # multiple of 128) to amortize per-step overhead on v5e/v6e.
    n_steps = max(2, pl.cdiv(B, 1024))
    return min(1024, _round_up(pl.cdiv(B, n_steps), 128))


def qnet_kernel(x_ref, w1_ref, b1_ref, w2_ref, b2_ref, whead_ref, bhead_ref,
                out_ref):
    # fc1: single K=48 matmul (bf16 operands, f32 accumulate on the MXU).
    h1 = jnp.dot(x_ref[...], w1_ref[...], preferred_element_type=jnp.float32)
    # bias + ReLU in bf16 (accumulator is downcast anyway for the next matmul).
    h1 = jnp.maximum(h1.astype(jnp.bfloat16) + b1_ref[...], 0.0)

    # fc2 + ReLU.
    h2 = jnp.dot(h1, w2_ref[...], preferred_element_type=jnp.float32)
    h2 = jnp.maximum(h2.astype(jnp.bfloat16) + b2_ref[...], 0.0)

    # Fused heads -> single lane-dense (TILE_B, 128) f32 output.
    out_ref[...] = (jnp.dot(h2, whead_ref[...],
                            preferred_element_type=jnp.float32)
                    + bhead_ref[...])


@functools.partial(jax.jit, static_argnames=("num_actions", "hidden_size"))
def qnet_forward(state, hidden_state, params, *, num_actions, hidden_size):
    """state: (B, input_dims), hidden_state: (B, hidden_size) -> (q_vals, hidden_)."""
    B = state.shape[0]
    in_total = state.shape[1] + hidden_size
    assert num_actions + hidden_size <= HEAD_PAD

    # Wrapper-side concat (cheap) feeds a single fused fc1 matmul.
    x = jnp.concatenate([state, hidden_state], axis=1).astype(jnp.bfloat16)

    TILE_B = _choose_tile_b(B)
    B_pad = _round_up(B, TILE_B)
    if B_pad != B:
        x = jnp.pad(x, ((0, B_pad - B), (0, 0)))

    rep = lambda shape: pl.BlockSpec(shape, lambda i: (0, 0))  # resident weights

    fused = pl.pallas_call(
        qnet_kernel,
        out_shape=jax.ShapeDtypeStruct((B_pad, HEAD_PAD), jnp.float32),
        grid=(B_pad // TILE_B,),
        in_specs=[
            pl.BlockSpec((TILE_B, in_total), lambda i: (i, 0)),  # [state|hidden] tile
            rep((in_total, FC1_DIMS)),                           # w1 (fused)
            rep((1, FC1_DIMS)),                                  # b1 (bf16)
            rep((FC1_DIMS, FC2_DIMS)),                           # w2
            rep((1, FC2_DIMS)),                                  # b2 (bf16)
            rep((FC2_DIMS, HEAD_PAD)),                           # fused head W
            rep((1, HEAD_PAD)),                                  # fused head b (f32)
        ],
        out_specs=pl.BlockSpec((TILE_B, HEAD_PAD), lambda i: (i, 0)),
        compiler_params=pltpu.CompilerParams(
            dimension_semantics=("parallel",)),
    )(
        x,
        params["w1"], params["b1"],
        params["w2"], params["b2"],
        params["whead"], params["bhead"],
    )

    q_vals = fused[:B, :num_actions]
    hidden_ = fused[:B, num_actions:num_actions + hidden_size]
    return q_vals, hidden_


def init_params(key, input_dims, num_actions, hidden_size):
    """Deterministic synthetic weights (PyTorch-Linear-like uniform fan-in init),
    stored pre-transposed (in, out). Matmul weights + fc biases in bf16,
    head bias in f32."""
    in_total = input_dims + hidden_size

    def linear(key, fan_in, fan_out):
        kw, kb = jax.random.split(key)
        bound = 1.0 / jnp.sqrt(fan_in)
        w = jax.random.uniform(kw, (fan_in, fan_out), jnp.float32, -bound, bound)
        b = jax.random.uniform(kb, (1, fan_out), jnp.float32, -bound, bound)
        return w, b

    k1, k2, k3, k4 = jax.random.split(key, 4)
    w1, b1 = linear(k1, in_total, FC1_DIMS)     # fused [state|hidden] -> fc1
    w2, b2 = linear(k2, FC1_DIMS, FC2_DIMS)
    wq, bq = linear(k3, FC2_DIMS, num_actions)
    wh, bh = linear(k4, FC2_DIMS, hidden_size)

    # Fuse + zero-pad the two heads into one lane-dense (512, 128) matmul.
    whead = jnp.zeros((FC2_DIMS, HEAD_PAD), jnp.float32)
    whead = whead.at[:, :num_actions].set(wq)
    whead = whead.at[:, num_actions:num_actions + hidden_size].set(wh)
    bhead = jnp.zeros((1, HEAD_PAD), jnp.float32)
    bhead = bhead.at[:, :num_actions].set(bq)
    bhead = bhead.at[:, num_actions:num_actions + hidden_size].set(bh)

    bf16 = jnp.bfloat16
    return dict(
        w1=w1.astype(bf16), b1=b1.astype(bf16),
        w2=w2.astype(bf16), b2=b2.astype(bf16),
        whead=whead.astype(bf16), bhead=bhead,
    )


def qnet_reference(state, hidden_state, p, num_actions, hidden_size):
    """Pure-JAX reference mirroring the kernel's bf16-operand / f32-accumulate math.
    (Inputs/weights are bf16, so results differ slightly from a pure-f32 PyTorch QNet.)"""
    f32 = jnp.float32
    x = jnp.concatenate([state, hidden_state], axis=1).astype(jnp.bfloat16)
    h1 = jnp.dot(x, p["w1"], preferred_element_type=f32)
    h1 = jnp.maximum(h1.astype(jnp.bfloat16) + p["b1"], 0.0)
    h2 = jnp.dot(h1, p["w2"], preferred_element_type=f32)
    h2 = jnp.maximum(h2.astype(jnp.bfloat16) + p["b2"], 0.0)
    out = jnp.dot(h2, p["whead"], preferred_element_type=f32) + p["bhead"]
    return out[:, :num_actions], out[:, num_actions:num_actions + hidden_size]


if __name__ == "__main__":
    # Small shapes consistent with QNet(input_dims=16, num_actions=4, hidden_size=32)
    B, input_dims, num_actions, hidden_size = 8, 16, 4, 32

    key = jax.random.PRNGKey(0)
    kp, ks, kh = jax.random.split(key, 3)

    params = init_params(kp, input_dims, num_actions, hidden_size)
    state = jax.random.normal(ks, (B, input_dims), jnp.float32)
    hidden_state = jax.random.normal(kh, (B, hidden_size), jnp.float32)

    q_vals, hidden_ = qnet_forward(state, hidden_state, params,
                                   num_actions=num_actions, hidden_size=hidden_size)
    jax.block_until_ready((q_vals, hidden_))

    # Sanity check against a pure-JAX reference using the same bf16 rounding.
    q_ref, h_ref = qnet_reference(state, hidden_state, params, num_actions, hidden_size)
    assert q_vals.shape == (B, num_actions) and hidden_.shape == (B, hidden_size)
    assert jnp.allclose(q_vals, q_ref, atol=1e-2, rtol=1e-2)
    assert jnp.allclose(hidden_, h_ref, atol=1e-2, rtol=1e-2)

    print("KERNEL_OK")
</pallas_src>

<mosaic_0001>
module attributes {stable_mosaic.version = 11 : i64} {
  func.func @qnet_kernel(%arg0: i32, %arg1: memref<16x48xbf16, #tpu.memory_space<vmem>>, %arg2: memref<48x1024xbf16, #tpu.memory_space<vmem>>, %arg3: memref<1x1024xbf16, #tpu.memory_space<vmem>>, %arg4: memref<1024x512xbf16, #tpu.memory_space<vmem>>, %arg5: memref<1x512xbf16, #tpu.memory_space<vmem>>, %arg6: memref<512x128xbf16, #tpu.memory_space<vmem>>, %arg7: memref<1x128xf32, #tpu.memory_space<vmem>>, %arg8: memref<16x128xf32, #tpu.memory_space<vmem>>) attributes {dimension_semantics = [#tpu.dimension_semantics<parallel>], iteration_bounds = array<i64: 1>, scalar_prefetch = 0 : i64, scratch_operands = 0 : i64, tpu.core_type = #tpu.core_type<tc>, window_params = [{transform_indices = @transform_0, window_bounds = array<i64: 16, 48>}, {pipeline_mode = #tpu.pipeline_mode<synchronous>, transform_indices = @transform_1, window_bounds = array<i64: 48, 1024>}, {pipeline_mode = #tpu.pipeline_mode<synchronous>, transform_indices = @transform_2, window_bounds = array<i64: 1, 1024>}, {pipeline_mode = #tpu.pipeline_mode<synchronous>, transform_indices = @transform_3, window_bounds = array<i64: 1024, 512>}, {pipeline_mode = #tpu.pipeline_mode<synchronous>, transform_indices = @transform_4, window_bounds = array<i64: 1, 512>}, {pipeline_mode = #tpu.pipeline_mode<synchronous>, transform_indices = @transform_5, window_bounds = array<i64: 512, 128>}, {pipeline_mode = #tpu.pipeline_mode<synchronous>, transform_indices = @transform_6, window_bounds = array<i64: 1, 128>}, {transform_indices = @transform_7, window_bounds = array<i64: 16, 128>}]} {
    %c0 = arith.constant 0 : index
    %c0_0 = arith.constant 0 : index
    %0 = vector.load %arg1[%c0, %c0_0] : memref<16x48xbf16, #tpu.memory_space<vmem>>, vector<16x48xbf16>
    %c0_1 = arith.constant 0 : index
    %c0_2 = arith.constant 0 : index
    %1 = vector.load %arg2[%c0_1, %c0_2] : memref<48x1024xbf16, #tpu.memory_space<vmem>>, vector<48x1024xbf16>
    %cst = arith.constant dense<0.000000e+00> : vector<16x1024xf32>
    %2 = tpu.matmul %0, %1, %cst {dimension_numbers = #tpu.dot_dimension_numbers<[1], [0], [0], [1], [0, 0, 1, 1], [], []>} : vector<16x48xbf16>, vector<48x1024xbf16>, vector<16x1024xf32> -> vector<16x1024xf32>
    %3 = arith.truncf %2 : vector<16x1024xf32> to vector<16x1024xbf16>
    %c0_3 = arith.constant 0 : index
    %c0_4 = arith.constant 0 : index
    %4 = vector.load %arg3[%c0_3, %c0_4] : memref<1x1024xbf16, #tpu.memory_space<vmem>>, vector<1x1024xbf16>
    %5 = vector.broadcast %4 : vector<1x1024xbf16> to vector<16x1024xbf16>
    %6 = arith.addf %3, %5 : vector<16x1024xbf16>
    %cst_5 = arith.constant 0.000000e+00 : bf16
    %7 = vector.broadcast %cst_5 : bf16 to vector<16x1024xbf16>
    %8 = arith.maximumf %6, %7 : vector<16x1024xbf16>
    %c0_6 = arith.constant 0 : index
    %c0_7 = arith.constant 0 : index
    %9 = vector.load %arg4[%c0_6, %c0_7] : memref<1024x512xbf16, #tpu.memory_space<vmem>>, vector<1024x512xbf16>
    %cst_8 = arith.constant dense<0.000000e+00> : vector<16x512xf32>
    %10 = tpu.matmul %8, %9, %cst_8 {dimension_numbers = #tpu.dot_dimension_numbers<[1], [0], [0], [1], [0, 0, 1, 1], [], []>} : vector<16x1024xbf16>, vector<1024x512xbf16>, vector<16x512xf32> -> vector<16x512xf32>
    %11 = arith.truncf %10 : vector<16x512xf32> to vector<16x512xbf16>
    %c0_9 = arith.constant 0 : index
    %c0_10 = arith.constant 0 : index
    %12 = vector.load %arg5[%c0_9, %c0_10] : memref<1x512xbf16, #tpu.memory_space<vmem>>, vector<1x512xbf16>
    %13 = vector.broadcast %12 : vector<1x512xbf16> to vector<16x512xbf16>
    %14 = arith.addf %11, %13 : vector<16x512xbf16>
    %cst_11 = arith.constant 0.000000e+00 : bf16
    %15 = vector.broadcast %cst_11 : bf16 to vector<16x512xbf16>
    %16 = arith.maximumf %14, %15 : vector<16x512xbf16>
    %c0_12 = arith.constant 0 : index
    %c0_13 = arith.constant 0 : index
    %17 = vector.load %arg6[%c0_12, %c0_13] : memref<512x128xbf16, #tpu.memory_space<vmem>>, vector<512x128xbf16>
    %cst_14 = arith.constant dense<0.000000e+00> : vector<16x128xf32>
    %18 = tpu.matmul %16, %17, %cst_14 {dimension_numbers = #tpu.dot_dimension_numbers<[1], [0], [0], [1], [0, 0, 1, 1], [], []>} : vector<16x512xbf16>, vector<512x128xbf16>, vector<16x128xf32> -> vector<16x128xf32>
    %c0_15 = arith.constant 0 : index
    %c0_16 = arith.constant 0 : index
    %19 = vector.load %arg7[%c0_15, %c0_16] : memref<1x128xf32, #tpu.memory_space<vmem>>, vector<1x128xf32>
    %20 = vector.broadcast %19 : vector<1x128xf32> to vector<16x128xf32>
    %21 = arith.addf %18, %20 : vector<16x128xf32>
    %c0_17 = arith.constant 0 : index
    %c0_18 = arith.constant 0 : index
    %22 = vector.load %arg8[%c0_17, %c0_18] : memref<16x128xf32, #tpu.memory_space<vmem>>, vector<16x128xf32>
    tpu.vector_store %arg8[%c0_17, %c0_18], %21 {strides = array<i32>} : memref<16x128xf32, #tpu.memory_space<vmem>>, vector<16x128xf32>,
    return
  }
  func.func @transform_0(%arg0: i32) -> (i32, i32) {
    %c0_i32 = arith.constant 0 : i32
    %c0_i32_0 = arith.constant 0 : i32
    return %arg0, %c0_i32 : i32, i32
  }
  func.func @transform_1(%arg0: i32) -> (i32, i32) {
    %c0_i32 = arith.constant 0 : i32
    %c0_i32_0 = arith.constant 0 : i32
    %c0_i32_1 = arith.constant 0 : i32
    return %c0_i32, %c0_i32_0 : i32, i32
  }
  func.func @transform_2(%arg0: i32) -> (i32, i32) {
    %c0_i32 = arith.constant 0 : i32
    %c0_i32_0 = arith.constant 0 : i32
    %c0_i32_1 = arith.constant 0 : i32
    return %c0_i32, %c0_i32_0 : i32, i32
  }
  func.func @transform_3(%arg0: i32) -> (i32, i32) {
    %c0_i32 = arith.constant 0 : i32
    %c0_i32_0 = arith.constant 0 : i32
    %c0_i32_1 = arith.constant 0 : i32
    return %c0_i32, %c0_i32_0 : i32, i32
  }
  func.func @transform_4(%arg0: i32) -> (i32, i32) {
    %c0_i32 = arith.constant 0 : i32
    %c0_i32_0 = arith.constant 0 : i32
    %c0_i32_1 = arith.constant 0 : i32
    return %c0_i32, %c0_i32_0 : i32, i32
  }
  func.func @transform_5(%arg0: i32) -> (i32, i32) {
    %c0_i32 = arith.constant 0 : i32
    %c0_i32_0 = arith.constant 0 : i32
    %c0_i32_1 = arith.constant 0 : i32
    return %c0_i32, %c0_i32_0 : i32, i32
  }
  func.func @transform_6(%arg0: i32) -> (i32, i32) {
    %c0_i32 = arith.constant 0 : i32
    %c0_i32_0 = arith.constant 0 : i32
    %c0_i32_1 = arith.constant 0 : i32
    return %c0_i32, %c0_i32_0 : i32, i32
  }
  func.func @transform_7(%arg0: i32) -> (i32, i32) {
    %c0_i32 = arith.constant 0 : i32
    %c0_i32_0 = arith.constant 0 : i32
    return %arg0, %c0_i32 : i32, i32
  }
}

</mosaic_0001>

<bundles_post_ra>
// kernel: qnet_forward.1
= control target key start
LH: loop header
LB: loop body
LE: loop exit
PB: predicated region body
PF: predicated region fallthrough
CT: control target
= control target key end

     0   :  { %12 = vsyncpa [#allocation3], 0  ;;  %s4730_s0 = inlined_call_operand.vmem [shape: bf16[16,48], index: 0, kind: input, shape index: {}]   ;;  %s4731_s1 = inlined_call_operand.hbm [shape: bf16[48,1024], index: 1, kind: input, shape index: {}]   ;;  %s4732_s2 = inlined_call_operand.vmem [shape: bf16[1,1024], index: 2, kind: input, shape index: {}]   ;;  %s4733_s3 = inlined_call_operand.hbm [shape: bf16[1024,512], index: 3, kind: input, shape index: {}]   ;;  %s4734_s4 = inlined_call_operand.vmem [shape: bf16[1,512], index: 4, kind: input, shape index: {}]   ;;  %s4735_s5 = inlined_call_operand.hbm [shape: bf16[512,128], index: 5, kind: input, shape index: {}]   ;;  %s4736_s6 = inlined_call_operand.vmem [shape: f32[1,128], index: 6, kind: input, shape index: {}]   ;;  %s4737_s7 = inlined_call_operand.vmem [shape: f32[16,128], index: 7, kind: output, shape index: {}]  }
   0x1   :  { %13 = vsyncpa [#allocation5], 0  ;;  %s35_s26 = sshll.u32 %s4733_s3, 4  ;;  %s4506_s27 = smov [#allocation4]   ;;  %s36_s26 = int_to_ptr.hbm [resolvable:$true] %s35_s26 }
   0x2   :  { %s37_s28 = sshll.u32 %s4506_s27, 4  ;;  %s20_s8 = sshll.u32 %s4731_s1, 4  ;;  %s38_s28 = int_to_ptr.vmem [resolvable:$true] %s37_s28  ;;  %s21_s8 = int_to_ptr.hbm [resolvable:$true] %s20_s8 }
   0x3   :  { %s4507_s9 = smov 256   ;;  %s4508_s10 = smov 16  }
   0x4   :  { %43 = dma.hbm_to_vmem [thread:$0]  %s36_s26, 32768, %s38_s28, [#allocation5], %s4507_s9, %s4507_s9, %s4508_s10  }
   0x5   :  { %s4509_s11 = smov [#allocation2]   ;;  %s4510_s13 = smov 512  }
   0x6   :  { %s22_s12 = sshll.u32 %s4509_s11, 4  ;;  %s4511_s14 = smov 32   ;;  %s23_s12 = int_to_ptr.vmem [resolvable:$true] %s22_s12 }
   0x7   :  { %28 = dma.hbm_to_vmem [thread:$0]  %s21_s8, 3072, %s23_s12, [#allocation3], %s4510_s13, %s4510_s13, %s4511_s14  }
   0x8   :  { %s50_s16 = sshll.u32 %s4735_s5, 4  ;;  %s4512_s17 = smov [#allocation6]   ;;  %s51_s16 = int_to_ptr.hbm [resolvable:$true] %s50_s16 }
   0x9   :  { %s52_s18 = sshll.u32 %s4512_s17, 4  ;;  %s4513_s19 = smov 64   ;;  %s53_s18 = int_to_ptr.vmem [resolvable:$true] %s52_s18 }
   0xa   :  { %s4514_s1 = smov 4  }
   0xb   :  { %58 = dma.hbm_to_vmem [thread:$0]  %s51_s16, 4096, %s53_s18, [#allocation5], %s4513_s19, %s4513_s19, %s4514_s1  }
   0xc   :  { %4502 = dma.done.wait [#allocation3], 3072  }
   0xd   :  { %4503 = vsyncadd [#allocation3], 4294964224 }
   0xe   :  { %4504 = dma.done.wait [#allocation5], 36864  }
   0xf   :  { %4505 = vsyncadd [#allocation5], 4294930432  ;;  %v2917_v0 = vld [vmem:[#allocation2 + $0x80] sm:$0xf]  ;;  %v4124_v2 = vld [vmem:[#allocation2 + $0x84] sm:$0xf] }
  0x10   :  { %v4128_v1 = vld [vmem:[#allocation2 + $0x9c] sm:$0xf0]  ;;  %v2919_v4 = vld [vmem:[#allocation2 + $0xa0] sm:$0xf0]  ;;  %v2925_v5 = vld [vmem:[#allocation2 + $0x88] sm:$0xf] }
  0x11   :  { %v2918_v3 = vor.u32 %v4128_v1, %v2917_v0  ;;  %v4129_v6 = vld [vmem:[#allocation2 + $0xa4] sm:$0xf0]  ;;  %v2922_v7 = vor.u32 %v4124_v2, %v2919_v4  ;;  %v4125_v9 = vld [vmem:[#allocation2 + $0x8c] sm:$0xf]  ;;  %v2885_v11 = vld [vmem:[#allocation2 + $0x40] sm:$0xf] }
  0x12   :  { %v2926_v8 = vor.u32 %v4129_v6, %v2925_v5  ;;  %v2927_v10 = vld [vmem:[#allocation2 + $0xa8] sm:$0xf0]  ;;  %v4120_v13 = vld [vmem:[#allocation2 + $0x5c] sm:$0xf0]  ;;  %v4116_v14 = vld [vmem:[#allocation2 + $0x44] sm:$0xf] }
  0x13   :  { %234 = vmatpush.bf16.msra.mxu0 %v2918_v3  ;;  %v2930_v12 = vor.u32 %v4125_v9, %v2927_v10  ;;  %v2887_v15 = vld [vmem:[#allocation2 + $0x60] sm:$0xf0]  ;;  %248 = vmatpush.bf16.msra.mxu1 %v2922_v7  ;;  %v2886_v16 = vor.u32 %v4120_v13, %v2885_v11  ;;  %v2893_v18 = vld [vmem:[#allocation2 + $0x48] sm:$0xf]  ;;  %v4117_v20 = vld [vmem:[#allocation2 + $0x4c] sm:$0xf] }
  0x14   :  { %262 = vmatpush.bf16.msra.mxu2 %v2926_v8  ;;  %v2890_v17 = vor.u32 %v4116_v14, %v2887_v15  ;;  %v4121_v19 = vld [vmem:[#allocation2 + $0x64] sm:$0xf0]  ;;  %v2895_v22 = vld [vmem:[#allocation2 + $0x68] sm:$0xf0]  ;;  %v2853_v23 = vld [vmem:[#allocation2] sm:$0xf] }
  0x15   :  { %276 = vmatpush.bf16.msra.mxu3 %v2930_v12  ;;  %v2894_v21 = vor.u32 %v4121_v19, %v2893_v18  ;;  %v4112_v24 = vld [vmem:[#allocation2 + $0x1c] sm:$0xf0]  ;;  %v2898_v25 = vor.u32 %v4117_v20, %v2895_v22  ;;  %v4108_v26 = vld [vmem:[#allocation2 + $0x4] sm:$0xf]  ;;  %v2861_v28 = vld [vmem:[#allocation2 + $0x8] sm:$0xf] }
  0x16   :  { %v2855_v27 = vld [vmem:[#allocation2 + $0x20] sm:$0xf0]  ;;  %v2854_v29 = vor.u32 %v4112_v24, %v2853_v23  ;;  %v4113_v30 = vld [vmem:[#allocation2 + $0x24] sm:$0xf0]  ;;  %v4109_v31 = vld [vmem:[#allocation2 + $0xc] sm:$0xf] }
  0x17   :  { %235 = vmatpush.bf16.msra.mxu0 %v2886_v16  ;;  %v2863_v32 = vld [vmem:[#allocation2 + $0x28] sm:$0xf0]  ;;  %249 = vmatpush.bf16.msra.mxu1 %v2890_v17  ;;  %v2858_v33 = vor.u32 %v4108_v26, %v2855_v27  ;;  %v2862_v34 = vor.u32 %v4113_v30, %v2861_v28  ;;  %v4567_v35 = vld [vmem:[%s4730_s0] sm:$0xff]  ;;  %vm225_vm0 = vcmask 392192   ;;  %v2933_v36 = vld [vmem:[#allocation2 + $0x90] sm:$0xf] }
  0x18   :  { %263 = vmatpush.bf16.msra.mxu2 %v2894_v21  ;;  %v4130_v37 = vld [vmem:[#allocation2 + $0xac] sm:$0xf0]  ;;  %v2866_v38 = vor.u32 %v4109_v31, %v2863_v32  ;;  %v4126_v40 = vld [vmem:[#allocation2 + $0x94] sm:$0xf]  ;;  %v2941_v42 = vld [vmem:[#allocation2 + $0x98] sm:$0xf] }
  0x19   :  { %277 = vmatpush.bf16.msra.mxu3 %v2898_v25  ;;  %v2934_v39 = vor.u32 %v4130_v37, %v2933_v36  ;;  %v2935_v41 = vld [vmem:[#allocation2 + $0xb0] sm:$0xf0]  ;;  %v4131_v44 = vld [vmem:[#allocation2 + $0xb4] sm:$0xf0]  ;;  %v4127_v45 = vld [vmem:[#allocation2 + $0x9c] sm:$0xf] }
  0x1a   :  { %v2938_v43 = vor.u32 %v4126_v40, %v2935_v41  ;;  %v2943_v46 = vld [vmem:[#allocation2 + $0xb8] sm:$0xf0]  ;;  %v2901_v47 = vld [vmem:[#allocation2 + $0x50] sm:$0xf]  ;;  %v4118_v49 = vld [vmem:[#allocation2 + $0x54] sm:$0xf]  ;;  %v2942_v50 = vor.u32 %v4131_v44, %v2941_v42 }
  0x1b   :  { %236 = vmatpush.bf16.msra.mxu0 %v2854_v29  ;;  %v4122_v48 = vld [vmem:[#allocation2 + $0x6c] sm:$0xf0]  ;;  %250 = vmatpush.bf16.msra.mxu1 %v2858_v33  ;;  %v2903_v51 = vld [vmem:[#allocation2 + $0x70] sm:$0xf0]  ;;  %v2946_v52 = vor.u32 %v4127_v45, %v2943_v46  ;;  %v2909_v54 = vld [vmem:[#allocation2 + $0x58] sm:$0xf] }
  0x1c   :  { %264 = vmatpush.bf16.msra.mxu2 %v2862_v34  ;;  %v2902_v53 = vor.u32 %v4122_v48, %v2901_v47  ;;  %v4123_v55 = vld [vmem:[#allocation2 + $0x74] sm:$0xf0]  ;;  %v4119_v56 = vld [vmem:[#allocation2 + $0x5c] sm:$0xf]  ;;  %v2906_v57 = vor.u32 %v4118_v49, %v2903_v51  ;;  %v2869_v59 = vld [vmem:[#allocation2 + $0x10] sm:$0xf] }
  0x1d   :  { %278 = vmatpush.bf16.msra.mxu3 %v2866_v38  ;;  %v2911_v58 = vld [vmem:[#allocation2 + $0x78] sm:$0xf0]  ;;  %v4114_v60 = vld [vmem:[#allocation2 + $0x2c] sm:$0xf0]  ;;  %v4110_v61 = vld [vmem:[#allocation2 + $0x14] sm:$0xf]  ;;  %v2910_v0 = vor.u32 %v4123_v55, %v2909_v54 }
  0x1e   :  { %2947 = vmatmul.msk.bf16.vlgmr.msra.gmra.mxu0 %vm225_vm0, %v4567_v35  ;;  %2948 = vmatmul.msk.bf16.vlgmr.msra.gmra.mxu1 %vm225_vm0, %v4567_v35  ;;  %v2871_v62 = vld [vmem:[#allocation2 + $0x30] sm:$0xf0]  ;;  %v2877_v63 = vld [vmem:[#allocation2 + $0x18] sm:$0xf]  ;;  %v3069_v2 = vld [vmem:[#allocation4 + $0xe0] sm:$0xf]  ;;  %v2914_v4 = vor.u32 %v4119_v56, %v2911_v58  ;;  %v2870_v5 = vor.u32 %v4114_v60, %v2869_v59 }
  0x1f   :  { %290 = vmatpush.bf16.msrb.mxu0 %v2934_v39  ;;  %304 = vmatpush.bf16.msrb.mxu1 %v2938_v43  ;;  %v4115_v1 = vld [vmem:[#allocation2 + $0x34] sm:$0xf0]  ;;  %v4162_v3 = vld [vmem:[#allocation4 + $0xec] sm:$0xf0]  ;;  %v4111_v6 = vld [vmem:[#allocation2 + $0x1c] sm:$0xf]  ;;  %v2874_v9 = vor.u32 %v4110_v61, %v2871_v62 }
  0x20   :  { %2949 = vmatmul.msk.bf16.vlgmr.msra.gmra.mxu2 %vm225_vm0, %v4567_v35  ;;  %2950 = vmatmul.msk.bf16.vlgmr.msra.gmra.mxu3 %vm225_vm0, %v4567_v35  ;;  %v3197_v7 = vld [vmem:[#allocation4 + $0x1e0] sm:$0xf]  ;;  %v4194_v8 = vld [vmem:[#allocation4 + $0x1ec] sm:$0xf0]  ;;  %v2879_v10 = vld [vmem:[#allocation2 + $0x38] sm:$0xf0]  ;;  %v3070_v11 = vor.u32 %v4162_v3, %v3069_v2  ;;  %v2878_v18 = vor.u32 %v4115_v1, %v2877_v63 }
  0x21   :  { %318 = vmatpush.bf16.msrb.mxu2 %v2942_v50  ;;  %332 = vmatpush.bf16.msrb.mxu3 %v2946_v52  ;;  %v3053_v12 = vld [vmem:[#allocation4 + $0xc0] sm:$0xf]  ;;  %v4158_v13 = vld [vmem:[#allocation4 + $0xcc] sm:$0xf0]  ;;  %v3198_v14 = vor.u32 %v4194_v8, %v3197_v7  ;;  %v2882_v22 = vor.u32 %v4111_v6, %v2879_v10 }
  0x22   :  { %v3325_v15 = vld [vmem:[#allocation4 + $0x2e0] sm:$0xf]  ;;  %v4226_v16 = vld [vmem:[#allocation4 + $0x2ec] sm:$0xf0]  ;;  %v3054_v24 = vor.u32 %v4158_v13, %v3053_v12 }
  0x23   :  { %291 = vmatpush.bf16.msrb.mxu0 %v2902_v53  ;;  %305 = vmatpush.bf16.msrb.mxu1 %v2906_v57  ;;  %v3453_v17 = vld [vmem:[#allocation4 + $0x3e0] sm:$0xf]  ;;  %v4190_v20 = vld [vmem:[#allocation4 + $0x1cc] sm:$0xf0]  ;;  %v3326_v23 = vor.u32 %v4226_v16, %v3325_v15 }
  0x24   :  { %v3181_v19 = vld [vmem:[#allocation4 + $0x1c0] sm:$0xf]  ;;  %v4258_v21 = vld [vmem:[#allocation4 + $0x3ec] sm:$0xf0] }
  0x25   :  { %319 = vmatpush.bf16.msrb.mxu2 %v2910_v0  ;;  %333 = vmatpush.bf16.msrb.mxu3 %v2914_v4  ;;  %v3454_v25 = vor.u32 %v4258_v21, %v3453_v17  ;;  %v3309_v26 = vld [vmem:[#allocation4 + $0x2c0] sm:$0xf]  ;;  %v4222_v27 = vld [vmem:[#allocation4 + $0x2cc] sm:$0xf0]  ;;  %v3182_v28 = vor.u32 %v4190_v20, %v3181_v19 }
  0x26   :  { %v3437_v29 = vld [vmem:[#allocation4 + $0x3c0] sm:$0xf]  ;;  %v4254_v30 = vld [vmem:[#allocation4 + $0x3cc] sm:$0xf0]  ;;  %v3310_v34 = vor.u32 %v4222_v27, %v3309_v26 }
  0x27   :  { %292 = vmatpush.bf16.msrb.mxu0 %v2870_v5  ;;  %306 = vmatpush.bf16.msrb.mxu1 %v2874_v9  ;;  %v3037_v31 = vld [vmem:[#allocation4 + $0xa0] sm:$0xf]  ;;  %v4154_v32 = vld [vmem:[#allocation4 + $0xac] sm:$0xf0]  ;;  %v3438_v37 = vor.u32 %v4254_v30, %v3437_v29 }
  0x28   :  { %v3165_v33 = vld [vmem:[#allocation4 + $0x1a0] sm:$0xf]  ;;  %v4186_v36 = vld [vmem:[#allocation4 + $0x1ac] sm:$0xf0]  ;;  %v3038_v42 = vor.u32 %v4154_v32, %v3037_v31 }
  0x29   :  { %320 = vmatpush.bf16.msrb.mxu2 %v2878_v18  ;;  %334 = vmatpush.bf16.msrb.mxu3 %v2882_v22  ;;  %v3293_v38 = vld [vmem:[#allocation4 + $0x2a0] sm:$0xf]  ;;  %v4218_v39 = vld [vmem:[#allocation4 + $0x2ac] sm:$0xf0]  ;;  %v3166_v43 = vor.u32 %v4186_v36, %v3165_v33 }
  0x2a   :  { %v3421_v40 = vld [vmem:[#allocation4 + $0x3a0] sm:$0xf]  ;;  %v4250_v41 = vld [vmem:[#allocation4 + $0x3ac] sm:$0xf0]  ;;  %v3294_v47 = vor.u32 %v4218_v39, %v3293_v38 }
  0x2b   :  { %2008 = vmatpush.bf16.msra.mxu0 %v3070_v11  ;;  %2022 = vmatpush.bf16.msra.mxu1 %v3198_v14  ;;  %v3021_v44 = vld [vmem:[#allocation4 + $0x80] sm:$0xf]  ;;  %v4150_v45 = vld [vmem:[#allocation4 + $0x8c] sm:$0xf0]  ;;  %v3422_v49 = vor.u32 %v4250_v41, %v3421_v40 }
  0x2c   :  { %v3149_v46 = vld [vmem:[#allocation4 + $0x180] sm:$0xf]  ;;  %v4182_v48 = vld [vmem:[#allocation4 + $0x18c] sm:$0xf0]  ;;  %v3022_v54 = vor.u32 %v4150_v45, %v3021_v44 }
  0x2d   :  { %2036 = vmatpush.bf16.msra.mxu2 %v3326_v23  ;;  %2050 = vmatpush.bf16.msra.mxu3 %v3454_v25  ;;  %v3277_v50 = vld [vmem:[#allocation4 + $0x280] sm:$0xf]  ;;  %v4214_v51 = vld [vmem:[#allocation4 + $0x28c] sm:$0xf0]  ;;  %v3150_v55 = vor.u32 %v4182_v48, %v3149_v46 }
  0x2e   :  { %2951 = vmatmul.msk.bf16.vlgmr.msrb.gmra.mxu0 %vm225_vm0, %v4567_v35  ;;  %2952 = vmatmul.msk.bf16.vlgmr.msrb.gmra.mxu1 %vm225_vm0, %v4567_v35  ;;  %v3405_v52 = vld [vmem:[#allocation4 + $0x380] sm:$0xf]  ;;  %v4246_v53 = vld [vmem:[#allocation4 + $0x38c] sm:$0xf0]  ;;  %v3278_v59 = vor.u32 %v4214_v51, %v3277_v50 }
  0x2f   :  { %2009 = vmatpush.bf16.msra.mxu0 %v3054_v24  ;;  %2023 = vmatpush.bf16.msra.mxu1 %v3182_v28  ;;  %v3005_v56 = vld [vmem:[#allocation4 + $0x60] sm:$0xf]  ;;  %v4146_v57 = vld [vmem:[#allocation4 + $0x6c] sm:$0xf0]  ;;  %v3406_v61 = vor.u32 %v4246_v53, %v3405_v52 }
  0x30   :  { %2953 = vmatmul.msk.bf16.vlgmr.msrb.gmra.mxu2 %vm225_vm0, %v4567_v35  ;;  %2954 = vmatmul.msk.bf16.vlgmr.msrb.gmra.mxu3 %vm225_vm0, %v4567_v35  ;;  %v3133_v58 = vld [vmem:[#allocation4 + $0x160] sm:$0xf]  ;;  %v4178_v60 = vld [vmem:[#allocation4 + $0x16c] sm:$0xf0]  ;;  %v3006_v2 = vor.u32 %v4146_v57, %v3005_v56 }
  0x31   :  { %2037 = vmatpush.bf16.msra.mxu2 %v3310_v34  ;;  %2051 = vmatpush.bf16.msra.mxu3 %v3438_v37  ;;  %v3261_v62 = vld [vmem:[#allocation4 + $0x260] sm:$0xf]  ;;  %v4210_v63 = vld [vmem:[#allocation4 + $0x26c] sm:$0xf0]  ;;  %v3134_v35 = vor.u32 %v4178_v60, %v3133_v58 }
  0x32   :  { %v3389_v0 = vld [vmem:[#allocation4 + $0x360] sm:$0xf]  ;;  %v4242_v1 = vld [vmem:[#allocation4 + $0x36c] sm:$0xf0]  ;;  %v3262_v6 = vor.u32 %v4210_v63, %v3261_v62 }
  0x33   :  { %2010 = vmatpush.bf16.msra.mxu0 %v3038_v42  ;;  %2024 = vmatpush.bf16.msra.mxu1 %v3166_v43  ;;  %v2989_v3 = vld [vmem:[#allocation4 + $0x40] sm:$0xf]  ;;  %v4142_v4 = vld [vmem:[#allocation4 + $0x4c] sm:$0xf0]  ;;  %v3390_v8 = vor.u32 %v4242_v1, %v3389_v0 }
  0x34   :  { %v3117_v5 = vld [vmem:[#allocation4 + $0x140] sm:$0xf]  ;;  %v4174_v7 = vld [vmem:[#allocation4 + $0x14c] sm:$0xf0]  ;;  %v2990_v13 = vor.u32 %v4142_v4, %v2989_v3 }
  0x35   :  { %2038 = vmatpush.bf16.msra.mxu2 %v3294_v47  ;;  %2052 = vmatpush.bf16.msra.mxu3 %v3422_v49  ;;  %v3245_v9 = vld [vmem:[#allocation4 + $0x240] sm:$0xf]  ;;  %v4206_v10 = vld [vmem:[#allocation4 + $0x24c] sm:$0xf0]  ;;  %v3118_v14 = vor.u32 %v4174_v7, %v3117_v5 }
  0x36   :  { %v3373_v11 = vld [vmem:[#allocation4 + $0x340] sm:$0xf]  ;;  %v4238_v12 = vld [vmem:[#allocation4 + $0x34c] sm:$0xf0]  ;;  %v3246_v18 = vor.u32 %v4206_v10, %v3245_v9 }
  0x37   :  { %2011 = vmatpush.bf16.msra.mxu0 %v3022_v54  ;;  %2025 = vmatpush.bf16.msra.mxu1 %v3150_v55  ;;  %v2973_v15 = vld [vmem:[#allocation4 + $0x20] sm:$0xf]  ;;  %v4138_v16 = vld [vmem:[#allocation4 + $0x2c] sm:$0xf0]  ;;  %v3374_v20 = vor.u32 %v4238_v12, %v3373_v11 }
  0x38   :  { %v3101_v17 = vld [vmem:[#allocation4 + $0x120] sm:$0xf]  ;;  %v4170_v19 = vld [vmem:[#allocation4 + $0x12c] sm:$0xf0]  ;;  %v2974_v25 = vor.u32 %v4138_v16, %v2973_v15 }
  0x39   :  { %2039 = vmatpush.bf16.msra.mxu2 %v3278_v59  ;;  %2053 = vmatpush.bf16.msra.mxu3 %v3406_v61  ;;  %v3229_v21 = vld [vmem:[#allocation4 + $0x220] sm:$0xf]  ;;  %v4202_v22 = vld [vmem:[#allocation4 + $0x22c] sm:$0xf0]  ;;  %v3102_v28 = vor.u32 %v4170_v19, %v3101_v17 }
  0x3a   :  { %v3357_v23 = vld [vmem:[#allocation4 + $0x320] sm:$0xf]  ;;  %v4234_v24 = vld [vmem:[#allocation4 + $0x32c] sm:$0xf0]  ;;  %v3230_v32 = vor.u32 %v4202_v22, %v3229_v21 }
  0x3b   :  { %2012 = vmatpush.bf16.msra.mxu0 %v3006_v2  ;;  %2026 = vmatpush.bf16.msra.mxu1 %v3134_v35  ;;  %v2957_v26 = vld [vmem:[#allocation4] sm:$0xf]  ;;  %v4134_v27 = vld [vmem:[#allocation4 + $0xc] sm:$0xf0]  ;;  %v3358_v37 = vor.u32 %v4234_v24, %v3357_v23  ;;  %v349_v2 = vld [vmem:[%s4732_s2] sm:$0xff] }
  0x3c   :  { %v3085_v29 = vld [vmem:[#allocation4 + $0x100] sm:$0xf]  ;;  %v4166_v30 = vld [vmem:[#allocation4 + $0x10c] sm:$0xf0]  ;;  %v2958_v41 = vor.u32 %v4134_v27, %v2957_v26  ;;  %351 = vst [vmem:[#allocation1] ss:$9 sm:$0xff] %v349_v2 }
  0x3d   :  { %2040 = vmatpush.bf16.msra.mxu2 %v3262_v6  ;;  %2054 = vmatpush.bf16.msra.mxu3 %v3390_v8  ;;  %v3581_v31 = vld [vmem:[#allocation4 + $0x4e0] sm:$0xf]  ;;  %v4290_v33 = vld [vmem:[#allocation4 + $0x4ec] sm:$0xf0]  ;;  %v3086_v45 = vor.u32 %v4166_v30, %v3085_v29 }
  0x3e   :  { %v3709_v34 = vld [vmem:[#allocation4 + $0x5e0] sm:$0xf]  ;;  %v4322_v36 = vld [vmem:[#allocation4 + $0x5ec] sm:$0xf0]  ;;  %v3582_v46 = vor.u32 %v4290_v33, %v3581_v31 }
  0x3f   :  { %2013 = vmatpush.bf16.msra.mxu0 %v2990_v13  ;;  %2027 = vmatpush.bf16.msra.mxu1 %v3118_v14  ;;  %v3213_v38 = vld [vmem:[#allocation4 + $0x200] sm:$0xf]  ;;  %v4198_v39 = vld [vmem:[#allocation4 + $0x20c] sm:$0xf0]  ;;  %v3710_v49 = vor.u32 %v4322_v36, %v3709_v34 }
  0x40   :  { %v3341_v40 = vld [vmem:[#allocation4 + $0x300] sm:$0xf]  ;;  %v4230_v42 = vld [vmem:[#allocation4 + $0x30c] sm:$0xf0]  ;;  %v3214_v52 = vor.u32 %v4198_v39, %v3213_v38 }
  0x41   :  { %2041 = vmatpush.bf16.msra.mxu2 %v3246_v18  ;;  %2055 = vmatpush.bf16.msra.mxu3 %v3374_v20  ;;  %v3837_v43 = vld [vmem:[#allocation4 + $0x6e0] sm:$0xf]  ;;  %v4354_v44 = vld [vmem:[#allocation4 + $0x6ec] sm:$0xf0]  ;;  %v3342_v55 = vor.u32 %v4230_v42, %v3341_v40 }
  0x42   :  { %v3965_v47 = vld [vmem:[#allocation4 + $0x7e0] sm:$0xf]  ;;  %v4386_v48 = vld [vmem:[#allocation4 + $0x7ec] sm:$0xf0]  ;;  %v3838_v56 = vor.u32 %v4354_v44, %v3837_v43 }
  0x43   :  { %2014 = vmatpush.bf16.msra.mxu0 %v2974_v25  ;;  %2028 = vmatpush.bf16.msra.mxu1 %v3102_v28  ;;  %v3565_v50 = vld [vmem:[#allocation4 + $0x4c0] sm:$0xf]  ;;  %v4286_v51 = vld [vmem:[#allocation4 + $0x4cc] sm:$0xf0]  ;;  %v3966_v57 = vor.u32 %v4386_v48, %v3965_v47 }
  0x44   :  { %v3693_v53 = vld [vmem:[#allocation4 + $0x5c0] sm:$0xf]  ;;  %v4318_v54 = vld [vmem:[#allocation4 + $0x5cc] sm:$0xf0]  ;;  %v3566_v58 = vor.u32 %v4286_v51, %v3565_v50 }
  0x45   :  { %2042 = vmatpush.bf16.msra.mxu2 %v3230_v32  ;;  %2056 = vmatpush.bf16.msra.mxu3 %v3358_v37  ;;  %v3694_v59 = vor.u32 %v4318_v54, %v3693_v53  ;;  %v3549_v60 = vld [vmem:[#allocation4 + $0x4a0] sm:$0xf]  ;;  %v4282_v61 = vld [vmem:[#allocation4 + $0x4ac] sm:$0xf0] }
  0x46   :  { %v3677_v62 = vld [vmem:[#allocation4 + $0x5a0] sm:$0xf]  ;;  %v4314_v63 = vld [vmem:[#allocation4 + $0x5ac] sm:$0xf0]  ;;  %v3550_v0 = vor.u32 %v4282_v61, %v3549_v60 }
  0x47   :  { %2015 = vmatpush.bf16.msra.mxu0 %v2958_v41  ;;  %2029 = vmatpush.bf16.msra.mxu1 %v3086_v45  ;;  %v3678_v1 = vor.u32 %v4314_v63, %v3677_v62  ;;  %v3821_v35 = vld [vmem:[#allocation4 + $0x6c0] sm:$0xf]  ;;  %v4350_v3 = vld [vmem:[#allocation4 + $0x6cc] sm:$0xf0] }
  0x48   :  { %v3822_v4 = vor.u32 %v4350_v3, %v3821_v35  ;;  %v3949_v5 = vld [vmem:[#allocation4 + $0x7c0] sm:$0xf]  ;;  %v4382_v6 = vld [vmem:[#allocation4 + $0x7cc] sm:$0xf0] }
  0x49   :  { %2043 = vmatpush.bf16.msra.mxu2 %v3214_v52  ;;  %2057 = vmatpush.bf16.msra.mxu3 %v3342_v55  ;;  %v3950_v7 = vor.u32 %v4382_v6, %v3949_v5  ;;  %v3533_v8 = vld [vmem:[#allocation4 + $0x480] sm:$0xf]  ;;  %v4278_v9 = vld [vmem:[#allocation4 + $0x48c] sm:$0xf0] }
  0x4a   :  { %v3661_v10 = vld [vmem:[#allocation4 + $0x580] sm:$0xf]  ;;  %v3534_v11 = vor.u32 %v4278_v9, %v3533_v8  ;;  %v4310_v12 = vld [vmem:[#allocation4 + $0x58c] sm:$0xf0] }
  0x4b   :  { %2064 = vmatpush.bf16.msrb.mxu0 %v3582_v46  ;;  %2078 = vmatpush.bf16.msrb.mxu1 %v3710_v49  ;;  %v3662_v13 = vor.u32 %v4310_v12, %v3661_v10  ;;  %v3805_v14 = vld [vmem:[#allocation4 + $0x6a0] sm:$0xf]  ;;  %v4346_v15 = vld [vmem:[#allocation4 + $0x6ac] sm:$0xf0]  ;;  %v352_v10 = vld [vmem:[#allocation1] sm:$0xff] }
  0x4c   :  { %v3933_v16 = vld [vmem:[#allocation4 + $0x7a0] sm:$0xf]  ;;  %v3806_v17 = vor.u32 %v4346_v15, %v3805_v14  ;;  %v4378_v18 = vld [vmem:[#allocation4 + $0x7ac] sm:$0xf0] }
  0x4d   :  { %2092 = vmatpush.bf16.msrb.mxu2 %v3838_v56  ;;  %2106 = vmatpush.bf16.msrb.mxu3 %v3966_v57  ;;  %v3934_v19 = vor.u32 %v4378_v18, %v3933_v16  ;;  %v3517_v20 = vld [vmem:[#allocation4 + $0x460] sm:$0xf]  ;;  %v4274_v21 = vld [vmem:[#allocation4 + $0x46c] sm:$0xf0] }
  0x4e   :  { %v3645_v22 = vld [vmem:[#allocation4 + $0x560] sm:$0xf]  ;;  %v3518_v23 = vor.u32 %v4274_v21, %v3517_v20  ;;  %v4306_v24 = vld [vmem:[#allocation4 + $0x56c] sm:$0xf0]  ;;  %v2460_v20 = vld [vmem:[%s4734_s4] sm:$0xf] }
  0x4f   :  { %2065 = vmatpush.bf16.msrb.mxu0 %v3566_v58  ;;  %2079 = vmatpush.bf16.msrb.mxu1 %v3694_v59  ;;  %v3789_v25 = vld [vmem:[#allocation4 + $0x680] sm:$0xf]  ;;  %v3646_v26 = vor.u32 %v4306_v24, %v3645_v22  ;;  %v4342_v27 = vld [vmem:[#allocation4 + $0x68c] sm:$0xf0] }
  0x50   :  { %v3917_v28 = vld [vmem:[#allocation4 + $0x780] sm:$0xf]  ;;  %v4374_v29 = vld [vmem:[#allocation4 + $0x78c] sm:$0xf0]  ;;  %v3790_v30 = vor.u32 %v4342_v27, %v3789_v25 }
  0x51   :  { %2093 = vmatpush.bf16.msrb.mxu2 %v3822_v4  ;;  %2107 = vmatpush.bf16.msrb.mxu3 %v3950_v7  ;;  %v3501_v31 = vld [vmem:[#allocation4 + $0x440] sm:$0xf]  ;;  %v3918_v32 = vor.u32 %v4374_v29, %v3917_v28  ;;  %v4270_v33 = vld [vmem:[#allocation4 + $0x44c] sm:$0xf0] }
  0x52   :  { %v3629_v34 = vld [vmem:[#allocation4 + $0x540] sm:$0xf]  ;;  %v3502_v36 = vor.u32 %v4270_v33, %v3501_v31  ;;  %v4302_v37 = vld [vmem:[#allocation4 + $0x54c] sm:$0xf0] }
  0x53   :  { %2066 = vmatpush.bf16.msrb.mxu0 %v3550_v0  ;;  %2080 = vmatpush.bf16.msrb.mxu1 %v3678_v1  ;;  %v3773_v38 = vld [vmem:[#allocation4 + $0x660] sm:$0xf]  ;;  %v4338_v39 = vld [vmem:[#allocation4 + $0x66c] sm:$0xf0]  ;;  %v3630_v40 = vor.u32 %v4302_v37, %v3629_v34 }
  0x54   :  { %v3774_v41 = vor.u32 %v4338_v39, %v3773_v38  ;;  %v3901_v42 = vld [vmem:[#allocation4 + $0x760] sm:$0xf]  ;;  %v4370_v43 = vld [vmem:[#allocation4 + $0x76c] sm:$0xf0] }
  0x55   :  { %2094 = vmatpush.bf16.msrb.mxu2 %v3806_v17  ;;  %2108 = vmatpush.bf16.msrb.mxu3 %v3934_v19  ;;  %v3902_v44 = vor.u32 %v4370_v43, %v3901_v42  ;;  %v3485_v45 = vld [vmem:[#allocation4 + $0x420] sm:$0xf]  ;;  %v4266_v46 = vld [vmem:[#allocation4 + $0x42c] sm:$0xf0]  ;;  %v357_v17 = vld [vmem:[#allocation1 + $0x2d] sm:$0xff] }
  0x56   :  { %v3613_v47 = vld [vmem:[#allocation4 + $0x520] sm:$0xf]  ;;  %v3486_v48 = vor.u32 %v4266_v46, %v3485_v45  ;;  %v4298_v49 = vld [vmem:[#allocation4 + $0x52c] sm:$0xf0]  ;;  %v4590_v19 = vld [vmem:[#allocation1 + $0x3f] sm:$0xff]  ;;  %v375_v46 = vpack.i.b16 %v357_v17, %v357_v17 }
  0x57   :  { %2067 = vmatpush.bf16.msrb.mxu0 %v3534_v11  ;;  %2081 = vmatpush.bf16.msrb.mxu1 %v3662_v13  ;;  %v3614_v50 = vor.u32 %v4298_v49, %v3613_v47  ;;  %v3757_v51 = vld [vmem:[#allocation4 + $0x640] sm:$0xf]  ;;  %v4334_v52 = vld [vmem:[#allocation4 + $0x64c] sm:$0xf0]  ;;  %v360_v13 = vpack.i.b16 %v352_v10, %v352_v10  ;;  %v4160_v47 = vld [vmem:[#allocation4 + $0xe4] sm:$0xf] }
  0x58   :  { %v3885_v53 = vld [vmem:[#allocation4 + $0x740] sm:$0xf]  ;;  %v3758_v54 = vor.u32 %v4334_v52, %v3757_v51  ;;  %v4366_v55 = vld [vmem:[#allocation4 + $0x74c] sm:$0xf0] }
  0x59   :  { %2095 = vmatpush.bf16.msrb.mxu2 %v3790_v30  ;;  %2109 = vmatpush.bf16.msrb.mxu3 %v3918_v32  ;;  %v3886_v56 = vor.u32 %v4366_v55, %v3885_v53  ;;  %v3469_v57 = vld [vmem:[#allocation4 + $0x400] sm:$0xf]  ;;  %v4262_v58 = vld [vmem:[#allocation4 + $0x40c] sm:$0xf0]  ;;  %v362_v24 = vperm.slane %v360_v13, 0 }
  0x5a   :  { %v3597_v59 = vld [vmem:[#allocation4 + $0x500] sm:$0xf]  ;;  %v3470_v60 = vor.u32 %v4262_v58, %v3469_v57  ;;  %v4294_v61 = vld [vmem:[#allocation4 + $0x50c] sm:$0xf0]  ;;  %v4192_v53 = vld [vmem:[#allocation4 + $0x1e4] sm:$0xf] }
  0x5b   :  { %2068 = vmatpush.bf16.msrb.mxu0 %v3518_v23  ;;  %2082 = vmatpush.bf16.msrb.mxu1 %v3646_v26  ;;  %v3598_v62 = vor.u32 %v4294_v61, %v3597_v59  ;;  %v3741_v63 = vld [vmem:[#allocation4 + $0x620] sm:$0xf]  ;;  %v4330_v0 = vld [vmem:[#allocation4 + $0x62c] sm:$0xf0]  ;;  %v400_v28 = vunpack.c.l.bf16 %v362_v24  ;;  %v3183_v13 = vld [vmem:[#allocation4 + $0x1d0] sm:$0xf0] }
  0x5c   :  { %v3869_v1 = vld [vmem:[#allocation4 + $0x720] sm:$0xf]  ;;  %v4362_v2 = vld [vmem:[#allocation4 + $0x72c] sm:$0xf0]  ;;  %v3742_v35 = vor.u32 %v4330_v0, %v3741_v63  ;;  %v3455_v24 = vld [vmem:[#allocation4 + $0x3f0] sm:$0xf0] }
  0x5d   :  { %2096 = vmatpush.bf16.msrb.mxu2 %v3774_v41  ;;  %2110 = vmatpush.bf16.msrb.mxu3 %v3902_v44  ;;  %v3870_v3 = vor.u32 %v4362_v2, %v3869_v1  ;;  %v3725_v4 = vld [vmem:[#allocation4 + $0x600] sm:$0xf]  ;;  %v4326_v5 = vld [vmem:[#allocation4 + $0x60c] sm:$0xf0]  ;;  %v381_v1 = vpack.i.b16 %v4590_v19, %v4590_v19  ;;  %v3327_v19 = vld [vmem:[#allocation4 + $0x2f0] sm:$0xf0] }
  0x5e   :  { %v3726_v6 = vor.u32 %v4326_v5, %v3725_v4  ;;  %v3853_v7 = vld [vmem:[#allocation4 + $0x700] sm:$0xf]  ;;  %v4358_v8 = vld [vmem:[#allocation4 + $0x70c] sm:$0xf0] }
  0x5f   :  { %2069 = vmatpush.bf16.msrb.mxu0 %v3502_v36  ;;  %2083 = vmatpush.bf16.msrb.mxu1 %v3630_v40  ;;  %v3854_v9 = vor.u32 %v4358_v8, %v3853_v7  ;;  %v353_v11 = vld [vmem:[#allocation1 + $0x9] sm:$0xff]  ;;  %v354_v12 = vld [vmem:[#allocation1 + $0x12] sm:$0xff]  ;;  %v355_v15 = vld [vmem:[#allocation1 + $0x1b] sm:$0xff] }
  0x60   :  { %v363_v14 = vpack.i.b16 %v353_v11, %v353_v11  ;;  %v356_v16 = vld [vmem:[#allocation1 + $0x24] sm:$0xff]  ;;  %v4588_v18 = vld [vmem:[#allocation1 + $0x36] sm:$0xff]  ;;  %v366_v31 = vpack.i.b16 %v354_v12, %v354_v12  ;;  %v369_v32 = vpack.i.b16 %v355_v15, %v355_v15  ;;  %v4605_v11 = vperm.slane %v375_v46, 0  ;;  %v4188_v12 = vld [vmem:[#allocation4 + $0x1c4] sm:$0xf] }
  0x61   :  { %2097 = vmatpush.bf16.msrb.mxu2 %v3758_v54  ;;  %2111 = vmatpush.bf16.msrb.mxu3 %v3886_v56  ;;  %2462 = vst [vmem:[#allocation1] ss:$9 sm:$0xff] %v2460_v20  ;;  %v372_v45 = vpack.i.b16 %v356_v16, %v356_v16  ;;  %v3199_v54 = vld [vmem:[#allocation4 + $0x1f0] sm:$0xf0]  ;;  %v378_v0 = vpack.i.b16 %v4588_v18, %v4588_v18  ;;  %v4224_v18 = vld [vmem:[#allocation4 + $0x2e4] sm:$0xf] }
  0x62   :  { %v365_v25 = vperm.slane %v363_v14, 0  ;;  %v368_v41 = vperm.slane %v366_v31, 0  ;;  %v371_v42 = vperm.slane %v369_v32, 0  ;;  %v3202_v5 = vor.u32 %v4192_v53, %v3199_v54  ;;  %v3055_v7 = vld [vmem:[#allocation4 + $0xd0] sm:$0xf0] }
  0x63   :  { %2070 = vmatpush.bf16.msrb.mxu0 %v3486_v48  ;;  %2084 = vmatpush.bf16.msrb.mxu1 %v3614_v50  ;;  %v3071_v48 = vld [vmem:[#allocation4 + $0xf0] sm:$0xf0]  ;;  %v4256_v20 = vld [vmem:[#allocation4 + $0x3e4] sm:$0xf] }
  0x64   :  { %v401_v29 = vunpack.c.l.bf16 %v365_v25  ;;  %v402_v57 = vunpack.c.l.bf16 %v368_v41  ;;  %v403_v58 = vunpack.c.l.bf16 %v371_v42  ;;  %v3074_v4 = vor.u32 %v4160_v47, %v3071_v48  ;;  %v4152_v25 = vld [vmem:[#allocation4 + $0xa4] sm:$0xf]  ;;  %v3167_v31 = vld [vmem:[#allocation4 + $0x1b0] sm:$0xf0] }
  0x65   :  { %2098 = vmatpush.bf16.msrb.mxu2 %v3742_v35  ;;  %2112 = vmatpush.bf16.msrb.mxu3 %v3870_v3  ;;  %v4599_v3 = vperm.slane %v372_v45, 0  ;;  %v3458_v45 = vor.u32 %v4256_v20, %v3455_v24  ;;  %v4220_v48 = vld [vmem:[#allocation4 + $0x2c4] sm:$0xf]  ;;  %v3007_v20 = vld [vmem:[#allocation4 + $0x70] sm:$0xf0] }
  0x66   :  { %v4252_v54 = vld [vmem:[#allocation4 + $0x3c4] sm:$0xf]  ;;  %v3135_v24 = vld [vmem:[#allocation4 + $0x170] sm:$0xf0] }
  0x67   :  { %2071 = vmatpush.bf16.msrb.mxu0 %v3470_v60  ;;  %2085 = vmatpush.bf16.msrb.mxu1 %v3598_v62 }
  0x69   :  { %2099 = vmatpush.bf16.msrb.mxu2 %v3726_v6  ;;  %2113 = vmatpush.bf16.msrb.mxu3 %v3854_v9  ;;  %v4156_v6 = vld [vmem:[#allocation4 + $0xc4] sm:$0xf] }
  0x9b   :  { %v238_v21 = vpop.f32.mrf.mxu0  ;;  %v252_v22 = vpop.f32.mrf.mxu1 }
  0x9c   :  { %v341_v23 = vpack.c.bf16 %v252_v22, %v238_v21  ;;  %v4609_v21 = vperm.slane %v378_v0, 0  ;;  %v4611_v22 = vperm.slane %v381_v1, 0 }
  0x9e   :  { %v384_v26 = vunpack.c.l.bf16 %v341_v23  ;;  %v385_v27 = vunpack.c.h.bf16 %v341_v23  ;;  %v3058_v23 = vor.u32 %v4156_v6, %v3055_v7  ;;  %v407_v0 = vunpack.c.l.bf16 %v4611_v22 }
  0xa0   :  { %v408_v37 = vadd.f32 %v400_v28, %v384_v26  ;;  %v409_v38 = vadd.f32 %v401_v29, %v385_v27 }
  0xa2   :  { %v448_v49 = vmax.f32 %v408_v37, 0.0  ;;  %v449_v50 = vmax.f32 %v409_v38, 0.0 }
  0xa3   :  { %v266_v30 = vpop.f32.mrf.mxu2  ;;  %v280_v33 = vpop.f32.mrf.mxu3 }
  0xa4   :  { %v240_v34 = vpop.f32.mrf.mxu0  ;;  %v254_v36 = vpop.f32.mrf.mxu1  ;;  %v342_v40 = vpack.c.bf16 %v280_v33, %v266_v30  ;;  %v4184_v30 = vld [vmem:[#allocation4 + $0x1a4] sm:$0xf] }
  0xa5   :  { %v345_v39 = vpack.c.bf16 %v254_v36, %v240_v34  ;;  %v404_v34 = vunpack.c.l.bf16 %v4599_v3  ;;  %v405_v36 = vunpack.c.l.bf16 %v4605_v11  ;;  %v3170_v47 = vor.u32 %v4184_v30, %v3167_v31  ;;  %v3295_v11 = vld [vmem:[#allocation4 + $0x2b0] sm:$0xf0]  ;;  %v4212_v30 = vld [vmem:[#allocation4 + $0x284] sm:$0xf] }
  0xa6   :  { %v386_v55 = vunpack.c.l.bf16 %v342_v40  ;;  %v387_v56 = vunpack.c.h.bf16 %v342_v40 }
  0xa7   :  { %v392_v43 = vunpack.c.l.bf16 %v345_v39  ;;  %v393_v44 = vunpack.c.h.bf16 %v345_v39 }
  0xa8   :  { %v410_v14 = vadd.f32 %v402_v57, %v386_v55  ;;  %v411_v15 = vadd.f32 %v403_v58, %v387_v56  ;;  %v3439_v55 = vld [vmem:[#allocation4 + $0x3d0] sm:$0xf0]  ;;  %v4148_v56 = vld [vmem:[#allocation4 + $0x84] sm:$0xf] }
  0xa9   :  { %v416_v51 = vadd.f32 %v400_v28, %v392_v43  ;;  %v417_v52 = vadd.f32 %v401_v29, %v393_v44  ;;  %v3186_v28 = vor.u32 %v4188_v12, %v3183_v13  ;;  %v3039_v29 = vld [vmem:[#allocation4 + $0xb0] sm:$0xf0]  ;;  %v3330_v44 = vor.u32 %v4224_v18, %v3327_v19  ;;  %v4248_v12 = vld [vmem:[#allocation4 + $0x3a4] sm:$0xf] }
  0xaa   :  { %v450_v37 = vmax.f32 %v410_v14, 0.0  ;;  %v451_v38 = vmax.f32 %v411_v15, 0.0  ;;  %v3042_v46 = vor.u32 %v4152_v25, %v3039_v29  ;;  %v3442_v3 = vor.u32 %v4252_v54, %v3439_v55  ;;  %v3423_v13 = vld [vmem:[#allocation4 + $0x3b0] sm:$0xf0]  ;;  %v4144_v18 = vld [vmem:[#allocation4 + $0x64] sm:$0xf] }
  0xab   :  { %v268_v59 = vpop.f32.mrf.mxu2  ;;  %v456_v60 = vmax.f32 %v416_v51, 0.0  ;;  %v457_v61 = vmax.f32 %v417_v52, 0.0  ;;  %v282_v62 = vpop.f32.mrf.mxu3  ;;  %v3426_v29 = vor.u32 %v4248_v12, %v3423_v13  ;;  %v4132_v13 = vld [vmem:[#allocation4 + $0x4] sm:$0xf] }
  0xac   :  { %v294_v63 = vpop.f32.mrf.mxu0  ;;  %v346_v2 = vpack.c.bf16 %v282_v62, %v268_v59  ;;  %v308_v35 = vpop.f32.mrf.mxu1  ;;  %v3151_v62 = vld [vmem:[#allocation4 + $0x190] sm:$0xf0] }
  0xad   :  { %v4601_v8 = vpack.c.bf16 %v456_v60, %v448_v49  ;;  %v4603_v9 = vpack.c.bf16 %v457_v61, %v449_v50  ;;  %v343_v10 = vpack.c.bf16 %v308_v35, %v294_v63  ;;  %v3311_v49 = vld [vmem:[#allocation4 + $0x2d0] sm:$0xf0]  ;;  %v4180_v61 = vld [vmem:[#allocation4 + $0x184] sm:$0xf]  ;;  %v406_v63 = vunpack.c.l.bf16 %v4609_v21 }
  0xae   :  { %v394_v16 = vunpack.c.l.bf16 %v346_v2  ;;  %v395_v17 = vunpack.c.h.bf16 %v346_v2  ;;  %v3023_v60 = vld [vmem:[#allocation4 + $0x90] sm:$0xf0]  ;;  %v3314_v35 = vor.u32 %v4220_v48, %v3311_v49 }
  0xaf   :  { %2016 = vmatmul.bf16.vlgmr.msra.gmra.mxu0 %v4601_v8  ;;  %2030 = vmatmul.bf16.vlgmr.msra.gmra.mxu1 %v4603_v9  ;;  %v388_v32 = vunpack.c.l.bf16 %v343_v10  ;;  %v389_v33 = vunpack.c.h.bf16 %v343_v10  ;;  %v3026_v7 = vor.u32 %v4148_v56, %v3023_v60  ;;  %v3154_v10 = vor.u32 %v4180_v61, %v3151_v62  ;;  %v4136_v62 = vld [vmem:[#allocation4 + $0x24] sm:$0xf]  ;;  %v3103_v21 = vld [vmem:[#allocation4 + $0x130] sm:$0xf0] }
  0xb0   :  { %v418_v26 = vadd.f32 %v402_v57, %v394_v16  ;;  %v419_v27 = vadd.f32 %v403_v58, %v395_v17  ;;  %2120 = vmatpush.bf16.msra.mxu0 %v3074_v4  ;;  %2134 = vmatpush.bf16.msra.mxu1 %v3202_v5  ;;  %v4216_v4 = vld [vmem:[#allocation4 + $0x2a4] sm:$0xf] }
  0xb1   :  { %v412_v57 = vadd.f32 %v404_v34, %v388_v32  ;;  %v413_v58 = vadd.f32 %v405_v36, %v389_v33 }
  0xb2   :  { %v458_v39 = vmax.f32 %v418_v26, 0.0  ;;  %v459_v40 = vmax.f32 %v419_v27, 0.0 }
  0xb3   :  { %v322_v41 = vpop.f32.mrf.mxu2  ;;  %v336_v42 = vpop.f32.mrf.mxu3  ;;  %v452_v14 = vmax.f32 %v412_v57, 0.0  ;;  %v453_v15 = vmax.f32 %v413_v58, 0.0  ;;  %v4240_v58 = vld [vmem:[#allocation4 + $0x364] sm:$0xf] }
  0xb4   :  { %v296_v43 = vpop.f32.mrf.mxu0  ;;  %v4615_v50 = vpack.c.bf16 %v458_v39, %v450_v37  ;;  %v4617_v51 = vpack.c.bf16 %v459_v40, %v451_v38  ;;  %v344_v52 = vpack.c.bf16 %v336_v42, %v322_v41  ;;  %2121 = vmatpush.bf16.msra.mxu0 %v3058_v23  ;;  %2135 = vmatpush.bf16.msra.mxu1 %v3186_v28  ;;  %v310_v53 = vpop.f32.mrf.mxu1  ;;  %v4176_v23 = vld [vmem:[#allocation4 + $0x164] sm:$0xf]  ;;  %v3407_v37 = vld [vmem:[#allocation4 + $0x390] sm:$0xf0] }
  0xb5   :  { %v347_v59 = vpack.c.bf16 %v310_v53, %v296_v43  ;;  %v3298_v28 = vor.u32 %v4216_v4, %v3295_v11  ;;  %v3010_v40 = vor.u32 %v4144_v18, %v3007_v20  ;;  %v3138_v41 = vor.u32 %v4176_v23, %v3135_v24  ;;  %v4140_v42 = vld [vmem:[#allocation4 + $0x44] sm:$0xf]  ;;  %v3263_v53 = vld [vmem:[#allocation4 + $0x270] sm:$0xf0] }
  0xb6   :  { %2044 = vmatmul.bf16.vlgmr.msra.gmra.mxu2 %v4615_v50  ;;  %2058 = vmatmul.bf16.vlgmr.msra.gmra.mxu3 %v4617_v51  ;;  %v390_v5 = vunpack.c.l.bf16 %v344_v52  ;;  %v391_v6 = vunpack.c.h.bf16 %v344_v52  ;;  %v4208_v52 = vld [vmem:[#allocation4 + $0x264] sm:$0xf]  ;;  %v3583_v18 = vld [vmem:[#allocation4 + $0x4f0] sm:$0xf0] }
  0xb7   :  { %v396_v1 = vunpack.c.l.bf16 %v347_v59  ;;  %v397_v2 = vunpack.c.h.bf16 %v347_v59  ;;  %2148 = vmatpush.bf16.msra.mxu2 %v3330_v44  ;;  %2162 = vmatpush.bf16.msra.mxu3 %v3458_v45  ;;  %v2991_v45 = vld [vmem:[#allocation4 + $0x50] sm:$0xf0]  ;;  %v3266_v22 = vor.u32 %v4208_v52, %v3263_v53  ;;  %v4320_v23 = vld [vmem:[#allocation4 + $0x5e4] sm:$0xf] }
  0xb8   :  { %2122 = vmatpush.bf16.msra.mxu0 %v3042_v46  ;;  %2136 = vmatpush.bf16.msra.mxu1 %v3170_v47  ;;  %v414_v31 = vadd.f32 %v406_v63, %v390_v5  ;;  %v415_v32 = vadd.f32 %v407_v0, %v391_v6  ;;  %v4172_v46 = vld [vmem:[#allocation4 + $0x144] sm:$0xf]  ;;  %v3119_v47 = vld [vmem:[#allocation4 + $0x150] sm:$0xf0]  ;;  %v2994_v60 = vor.u32 %v4140_v42, %v2991_v45 }
  0xb9   :  { %v420_v16 = vadd.f32 %v404_v34, %v396_v1  ;;  %v421_v17 = vadd.f32 %v405_v36, %v397_v2  ;;  %v3279_v34 = vld [vmem:[#allocation4 + $0x290] sm:$0xf0]  ;;  %v4244_v36 = vld [vmem:[#allocation4 + $0x384] sm:$0xf]  ;;  %v3122_v61 = vor.u32 %v4172_v46, %v3119_v47 }
  0xba   :  { %v3282_v48 = vor.u32 %v4212_v30, %v3279_v34  ;;  %v3410_v49 = vor.u32 %v4244_v36, %v3407_v37  ;;  %v454_v54 = vmax.f32 %v414_v31, 0.0  ;;  %v455_v55 = vmax.f32 %v415_v32, 0.0  ;;  %v3391_v59 = vld [vmem:[#allocation4 + $0x370] sm:$0xf0]  ;;  %v4316_v36 = vld [vmem:[#allocation4 + $0x5c4] sm:$0xf] }
  0xbb   :  { %v324_v19 = vpop.f32.mrf.mxu2  ;;  %v460_v25 = vmax.f32 %v420_v16, 0.0  ;;  %v461_v26 = vmax.f32 %v421_v17, 0.0  ;;  %2149 = vmatpush.bf16.msra.mxu2 %v3314_v35  ;;  %2163 = vmatpush.bf16.msra.mxu3 %v3442_v3  ;;  %v338_v27 = vpop.f32.mrf.mxu3  ;;  %v2975_v1 = vld [vmem:[#allocation4 + $0x30] sm:$0xf0]  ;;  %v4168_v3 = vld [vmem:[#allocation4 + $0x124] sm:$0xf] }
  0xbc   :  { %v348_v33 = vpack.c.bf16 %v338_v27, %v324_v19  ;;  %2123 = vmatpush.bf16.msra.mxu0 %v3026_v7  ;;  %2137 = vmatpush.bf16.msra.mxu1 %v3154_v10  ;;  %v3247_v6 = vld [vmem:[#allocation4 + $0x250] sm:$0xf0]  ;;  %v4236_v7 = vld [vmem:[#allocation4 + $0x344] sm:$0xf]  ;;  %v2978_v11 = vor.u32 %v4136_v62, %v2975_v1  ;;  %v3106_v12 = vor.u32 %v4168_v3, %v3103_v21 }
  0xbd   :  { %v4627_v38 = vpack.c.bf16 %v460_v25, %v452_v14  ;;  %v4629_v39 = vpack.c.bf16 %v461_v26, %v453_v15  ;;  %v3375_v10 = vld [vmem:[#allocation4 + $0x350] sm:$0xf0]  ;;  %v4164_v15 = vld [vmem:[#allocation4 + $0x104] sm:$0xf] }
  0xbe   :  { %v398_v43 = vunpack.c.l.bf16 %v348_v33  ;;  %v399_v44 = vunpack.c.h.bf16 %v348_v33  ;;  %v2959_v14 = vld [vmem:[#allocation4 + $0x10] sm:$0xf0]  ;;  %v4288_v17 = vld [vmem:[#allocation4 + $0x4e4] sm:$0xf]  ;;  %v3378_v20 = vor.u32 %v4236_v7, %v3375_v10 }
  0xbf   :  { %2150 = vmatpush.bf16.msra.mxu2 %v3298_v28  ;;  %2164 = vmatpush.bf16.msra.mxu3 %v3426_v29  ;;  %v3087_v16 = vld [vmem:[#allocation4 + $0x110] sm:$0xf0]  ;;  %v4200_v25 = vld [vmem:[#allocation4 + $0x224] sm:$0xf]  ;;  %v2962_v29 = vor.u32 %v4132_v13, %v2959_v14  ;;  %v3586_v31 = vor.u32 %v4288_v17, %v3583_v18 }
  0xc0   :  { %v422_v56 = vadd.f32 %v406_v63, %v398_v43  ;;  %v423_v57 = vadd.f32 %v407_v0, %v399_v44  ;;  %2072 = vmatmul.bf16.vlgmr.msrb.gmra.mxu0 %v4627_v38  ;;  %2086 = vmatmul.bf16.vlgmr.msrb.gmra.mxu1 %v4629_v39  ;;  %v3394_v63 = vor.u32 %v4240_v58, %v3391_v59  ;;  %v4204_v0 = vld [vmem:[#allocation4 + $0x244] sm:$0xf]  ;;  %v3711_v24 = vld [vmem:[#allocation4 + $0x5f0] sm:$0xf0] }
  0xc1   :  { %2124 = vmatpush.bf16.msra.mxu0 %v3010_v40  ;;  %2138 = vmatpush.bf16.msra.mxu1 %v3138_v41  ;;  %v3250_v19 = vor.u32 %v4204_v0, %v3247_v6  ;;  %v3231_v26 = vld [vmem:[#allocation4 + $0x230] sm:$0xf0]  ;;  %v4232_v27 = vld [vmem:[#allocation4 + $0x324] sm:$0xf]  ;;  %v3090_v30 = vor.u32 %v4164_v15, %v3087_v16  ;;  %v3714_v32 = vor.u32 %v4320_v23, %v3711_v24 }
  0xc2   :  { %v462_v2 = vmax.f32 %v422_v56, 0.0  ;;  %v463_v35 = vmax.f32 %v423_v57, 0.0  ;;  %v3359_v28 = vld [vmem:[#allocation4 + $0x330] sm:$0xf0]  ;;  %v4284_v33 = vld [vmem:[#allocation4 + $0x4c4] sm:$0xf]  ;;  %v3234_v37 = vor.u32 %v4200_v25, %v3231_v26 }
  0xc3   :  { %2151 = vmatpush.bf16.msra.mxu2 %v3282_v48  ;;  %2165 = vmatpush.bf16.msra.mxu3 %v3410_v49  ;;  %v3567_v34 = vld [vmem:[#allocation4 + $0x4d0] sm:$0xf0]  ;;  %v3362_v40 = vor.u32 %v4232_v27, %v3359_v28  ;;  %v4196_v42 = vld [vmem:[#allocation4 + $0x204] sm:$0xf] }
  0xc4   :  { %v4637_v4 = vpack.c.bf16 %v462_v2, %v454_v54  ;;  %v4639_v5 = vpack.c.bf16 %v463_v35, %v455_v55  ;;  %v3695_v41 = vld [vmem:[#allocation4 + $0x5d0] sm:$0xf0]  ;;  %v4228_v44 = vld [vmem:[#allocation4 + $0x304] sm:$0xf]  ;;  %v3570_v52 = vor.u32 %v4284_v33, %v3567_v34 }
  0xc5   :  { %2125 = vmatpush.bf16.msra.mxu0 %v2994_v60  ;;  %2139 = vmatpush.bf16.msra.mxu1 %v3122_v61  ;;  %v3215_v43 = vld [vmem:[#allocation4 + $0x210] sm:$0xf0]  ;;  %v4352_v46 = vld [vmem:[#allocation4 + $0x6e4] sm:$0xf]  ;;  %v3698_v53 = vor.u32 %v4316_v36, %v3695_v41 }
  0xc6   :  { %2100 = vmatmul.bf16.vlgmr.msrb.gmra.mxu2 %v4637_v4  ;;  %2114 = vmatmul.bf16.vlgmr.msrb.gmra.mxu3 %v4639_v5  ;;  %v3343_v45 = vld [vmem:[#allocation4 + $0x310] sm:$0xf0]  ;;  %v4384_v48 = vld [vmem:[#allocation4 + $0x7e4] sm:$0xf]  ;;  %v3218_v55 = vor.u32 %v4196_v42, %v3215_v43 }
  0xc7   :  { %2152 = vmatpush.bf16.msra.mxu2 %v3266_v22  ;;  %2166 = vmatpush.bf16.msra.mxu3 %v3394_v63  ;;  %v3839_v47 = vld [vmem:[#allocation4 + $0x6f0] sm:$0xf0]  ;;  %v4280_v54 = vld [vmem:[#allocation4 + $0x4a4] sm:$0xf]  ;;  %v3346_v56 = vor.u32 %v4228_v44, %v3343_v45 }
  0xc8   :  { %v3967_v49 = vld [vmem:[#allocation4 + $0x7f0] sm:$0xf0]  ;;  %v4312_v58 = vld [vmem:[#allocation4 + $0x5a4] sm:$0xf]  ;;  %v3842_v60 = vor.u32 %v4352_v46, %v3839_v47 }
  0xc9   :  { %2126 = vmatpush.bf16.msra.mxu0 %v2978_v11  ;;  %2140 = vmatpush.bf16.msra.mxu1 %v3106_v12  ;;  %v3551_v57 = vld [vmem:[#allocation4 + $0x4b0] sm:$0xf0]  ;;  %v3970_v61 = vor.u32 %v4384_v48, %v3967_v49  ;;  %v4348_v62 = vld [vmem:[#allocation4 + $0x6c4] sm:$0xf] }
  0xca   :  { %v3679_v59 = vld [vmem:[#allocation4 + $0x5b0] sm:$0xf0]  ;;  %v4380_v2 = vld [vmem:[#allocation4 + $0x7c4] sm:$0xf]  ;;  %v3554_v3 = vor.u32 %v4280_v54, %v3551_v57 }
  0xcb   :  { %2153 = vmatpush.bf16.msra.mxu2 %v3250_v19  ;;  %2167 = vmatpush.bf16.msra.mxu3 %v3378_v20  ;;  %v3823_v1 = vld [vmem:[#allocation4 + $0x6d0] sm:$0xf0]  ;;  %v3682_v21 = vor.u32 %v4312_v58, %v3679_v59  ;;  %v4276_v22 = vld [vmem:[#allocation4 + $0x484] sm:$0xf] }
  0xcc   :  { %v3951_v35 = vld [vmem:[#allocation4 + $0x7d0] sm:$0xf0]  ;;  %v4308_v0 = vld [vmem:[#allocation4 + $0x584] sm:$0xf]  ;;  %v3826_v7 = vor.u32 %v4348_v62, %v3823_v1 }
  0xcd   :  { %2127 = vmatpush.bf16.msra.mxu0 %v2962_v29  ;;  %2141 = vmatpush.bf16.msra.mxu1 %v3090_v30  ;;  %v3535_v63 = vld [vmem:[#allocation4 + $0x490] sm:$0xf0]  ;;  %v3954_v10 = vor.u32 %v4380_v2, %v3951_v35  ;;  %v4344_v11 = vld [vmem:[#allocation4 + $0x6a4] sm:$0xf]  ;;  %v3077_v2 = vld [vmem:[#allocation4 + $0xe8] sm:$0xf] }
  0xce   :  { %v3663_v6 = vld [vmem:[#allocation4 + $0x590] sm:$0xf0]  ;;  %v4376_v13 = vld [vmem:[#allocation4 + $0x7a4] sm:$0xf]  ;;  %v3538_v15 = vor.u32 %v4276_v22, %v3535_v63  ;;  %v4163_v35 = vld [vmem:[#allocation4 + $0xf4] sm:$0xf0] }
  0xcf   :  { %2154 = vmatpush.bf16.msra.mxu2 %v3234_v37  ;;  %2168 = vmatpush.bf16.msra.mxu3 %v3362_v40  ;;  %v3807_v12 = vld [vmem:[#allocation4 + $0x6b0] sm:$0xf0]  ;;  %v3666_v16 = vor.u32 %v4308_v0, %v3663_v6  ;;  %v4272_v17 = vld [vmem:[#allocation4 + $0x464] sm:$0xf]  ;;  %v3205_v22 = vld [vmem:[#allocation4 + $0x1e8] sm:$0xf] }
  0xd0   :  { %2128 = vmatmul.bf16.vlgmr.msra.gmra.mxu0 %v4601_v8  ;;  %2142 = vmatmul.bf16.vlgmr.msra.gmra.mxu1 %v4603_v9  ;;  %v3935_v14 = vld [vmem:[#allocation4 + $0x7b0] sm:$0xf0]  ;;  %v4304_v19 = vld [vmem:[#allocation4 + $0x564] sm:$0xf]  ;;  %v3810_v23 = vor.u32 %v4344_v11, %v3807_v12  ;;  %v4195_v63 = vld [vmem:[#allocation4 + $0x1f4] sm:$0xf0] }
  0xd1   :  { %2176 = vmatpush.bf16.msrb.mxu0 %v3586_v31  ;;  %2190 = vmatpush.bf16.msrb.mxu1 %v3714_v32  ;;  %v3519_v18 = vld [vmem:[#allocation4 + $0x470] sm:$0xf0]  ;;  %v3938_v24 = vor.u32 %v4376_v13, %v3935_v14  ;;  %v4340_v25 = vld [vmem:[#allocation4 + $0x684] sm:$0xf]  ;;  %v3078_v13 = vor.u32 %v4163_v35, %v3077_v2  ;;  %v3206_v14 = vor.u32 %v4195_v63, %v3205_v22  ;;  %v3013_v2 = vld [vmem:[#allocation4 + $0x68] sm:$0xf] }
  0xd2   :  { %v3647_v20 = vld [vmem:[#allocation4 + $0x570] sm:$0xf0]  ;;  %v4372_v27 = vld [vmem:[#allocation4 + $0x784] sm:$0xf]  ;;  %v3522_v29 = vor.u32 %v4272_v17, %v3519_v18  ;;  %v3189_v17 = vld [vmem:[#allocation4 + $0x1c8] sm:$0xf] }
  0xd3   :  { %2155 = vmatpush.bf16.msra.mxu2 %v3218_v55  ;;  %2169 = vmatpush.bf16.msra.mxu3 %v3346_v56  ;;  %v3791_v26 = vld [vmem:[#allocation4 + $0x690] sm:$0xf0]  ;;  %v3650_v30 = vor.u32 %v4304_v19, %v3647_v20  ;;  %v4268_v31 = vld [vmem:[#allocation4 + $0x444] sm:$0xf]  ;;  %v4191_v20 = vld [vmem:[#allocation4 + $0x1d4] sm:$0xf0] }
  0xd4   :  { %v3919_v28 = vld [vmem:[#allocation4 + $0x790] sm:$0xf0]  ;;  %v4300_v33 = vld [vmem:[#allocation4 + $0x544] sm:$0xf]  ;;  %v3794_v36 = vor.u32 %v4340_v25, %v3791_v26  ;;  %v4147_v35 = vld [vmem:[#allocation4 + $0x74] sm:$0xf0] }
  0xd5   :  { %2177 = vmatpush.bf16.msrb.mxu0 %v3570_v52  ;;  %2191 = vmatpush.bf16.msrb.mxu1 %v3698_v53  ;;  %v3503_v32 = vld [vmem:[#allocation4 + $0x450] sm:$0xf0]  ;;  %v3922_v37 = vor.u32 %v4372_v27, %v3919_v28  ;;  %v4336_v40 = vld [vmem:[#allocation4 + $0x664] sm:$0xf]  ;;  %v3333_v27 = vld [vmem:[#allocation4 + $0x2e8] sm:$0xf] }
  0xd6   :  { %2156 = vmatmul.bf16.vlgmr.msra.gmra.mxu2 %v4615_v50  ;;  %2170 = vmatmul.bf16.vlgmr.msra.gmra.mxu3 %v4617_v51  ;;  %v3631_v34 = vld [vmem:[#allocation4 + $0x550] sm:$0xf0]  ;;  %v4368_v42 = vld [vmem:[#allocation4 + $0x764] sm:$0xf]  ;;  %v3506_v44 = vor.u32 %v4268_v31, %v3503_v32  ;;  %v4227_v28 = vld [vmem:[#allocation4 + $0x2f4] sm:$0xf0]  ;;  %v3190_v32 = vor.u32 %v4191_v20, %v3189_v17 }
  0xd7   :  { %2204 = vmatpush.bf16.msrb.mxu2 %v3842_v60  ;;  %2218 = vmatpush.bf16.msrb.mxu3 %v3970_v61  ;;  %v3775_v41 = vld [vmem:[#allocation4 + $0x670] sm:$0xf0]  ;;  %v3634_v45 = vor.u32 %v4300_v33, %v3631_v34  ;;  %v4264_v46 = vld [vmem:[#allocation4 + $0x424] sm:$0xf]  ;;  %v3141_v22 = vld [vmem:[#allocation4 + $0x168] sm:$0xf] }
  0xd8   :  { %v3903_v43 = vld [vmem:[#allocation4 + $0x770] sm:$0xf0]  ;;  %v4296_v48 = vld [vmem:[#allocation4 + $0x524] sm:$0xf]  ;;  %v3778_v52 = vor.u32 %v4336_v40, %v3775_v41  ;;  %v3334_v40 = vor.u32 %v4227_v28, %v3333_v27  ;;  %v4179_v63 = vld [vmem:[#allocation4 + $0x174] sm:$0xf0] }
  0xd9   :  { %2178 = vmatpush.bf16.msrb.mxu0 %v3554_v3  ;;  %2192 = vmatpush.bf16.msrb.mxu1 %v3682_v21  ;;  %v3487_v47 = vld [vmem:[#allocation4 + $0x430] sm:$0xf0]  ;;  %v3906_v53 = vor.u32 %v4368_v42, %v3903_v43  ;;  %v4332_v54 = vld [vmem:[#allocation4 + $0x644] sm:$0xf]  ;;  %v3173_v42 = vld [vmem:[#allocation4 + $0x1a8] sm:$0xf] }
  0xda   :  { %v3615_v49 = vld [vmem:[#allocation4 + $0x530] sm:$0xf0]  ;;  %v4364_v56 = vld [vmem:[#allocation4 + $0x744] sm:$0xf]  ;;  %v3490_v58 = vor.u32 %v4264_v46, %v3487_v47  ;;  %v4187_v43 = vld [vmem:[#allocation4 + $0x1b4] sm:$0xf0] }
  0xdb   :  { %2205 = vmatpush.bf16.msrb.mxu2 %v3826_v7  ;;  %2219 = vmatpush.bf16.msrb.mxu3 %v3954_v10  ;;  %v3759_v55 = vld [vmem:[#allocation4 + $0x650] sm:$0xf0]  ;;  %v3618_v59 = vor.u32 %v4296_v48, %v3615_v49  ;;  %v4260_v60 = vld [vmem:[#allocation4 + $0x404] sm:$0xf]  ;;  %v3445_v46 = vld [vmem:[#allocation4 + $0x3c8] sm:$0xf]  ;;  %v3174_v49 = vor.u32 %v4187_v43, %v3173_v42 }
  0xdc   :  { %v3887_v57 = vld [vmem:[#allocation4 + $0x750] sm:$0xf0]  ;;  %v4292_v62 = vld [vmem:[#allocation4 + $0x504] sm:$0xf]  ;;  %v3762_v3 = vor.u32 %v4332_v54, %v3759_v55  ;;  %v4255_v47 = vld [vmem:[#allocation4 + $0x3d4] sm:$0xf0] }
  0xdd   :  { %2179 = vmatpush.bf16.msrb.mxu0 %v3538_v15  ;;  %2193 = vmatpush.bf16.msrb.mxu1 %v3666_v16  ;;  %v3471_v61 = vld [vmem:[#allocation4 + $0x410] sm:$0xf0]  ;;  %v3890_v21 = vor.u32 %v4364_v56, %v3887_v57  ;;  %v4328_v0 = vld [vmem:[#allocation4 + $0x624] sm:$0xf]  ;;  %v3061_v15 = vld [vmem:[#allocation4 + $0xc8] sm:$0xf]  ;;  %v3446_v55 = vor.u32 %v4255_v47, %v3445_v46 }
  0xde   :  { %v3599_v1 = vld [vmem:[#allocation4 + $0x510] sm:$0xf0]  ;;  %v4360_v7 = vld [vmem:[#allocation4 + $0x724] sm:$0xf]  ;;  %v3474_v11 = vor.u32 %v4260_v60, %v3471_v61  ;;  %v4159_v16 = vld [vmem:[#allocation4 + $0xd4] sm:$0xf0] }
  0xdf   :  { %2206 = vmatpush.bf16.msrb.mxu2 %v3810_v23  ;;  %2220 = vmatpush.bf16.msrb.mxu3 %v3938_v24  ;;  %v3743_v6 = vld [vmem:[#allocation4 + $0x630] sm:$0xf0]  ;;  %v3602_v12 = vor.u32 %v4292_v62, %v3599_v1  ;;  %v4324_v23 = vld [vmem:[#allocation4 + $0x604] sm:$0xf]  ;;  %v3062_v31 = vor.u32 %v4159_v16, %v3061_v15  ;;  %v3157_v56 = vld [vmem:[#allocation4 + $0x188] sm:$0xf] }
  0xe0   :  { %v3871_v10 = vld [vmem:[#allocation4 + $0x730] sm:$0xf0]  ;;  %v3746_v18 = vor.u32 %v4328_v0, %v3743_v6  ;;  %v4356_v25 = vld [vmem:[#allocation4 + $0x704] sm:$0xf]  ;;  %v4183_v57 = vld [vmem:[#allocation4 + $0x194] sm:$0xf0] }
  0xe1   :  { %2180 = vmatpush.bf16.msrb.mxu0 %v3522_v29  ;;  %2194 = vmatpush.bf16.msrb.mxu1 %v3650_v30  ;;  %v3874_v19 = vor.u32 %v4360_v7, %v3871_v10  ;;  %v3727_v24 = vld [vmem:[#allocation4 + $0x610] sm:$0xf0]  ;;  %v3461_v29 = vld [vmem:[#allocation4 + $0x3e8] sm:$0xf]  ;;  %v4259_v30 = vld [vmem:[#allocation4 + $0x3f4] sm:$0xf0]  ;;  %v3158_v1 = vor.u32 %v4183_v57, %v3157_v56 }
  0xe2   :  { %v3855_v26 = vld [vmem:[#allocation4 + $0x710] sm:$0xf0]  ;;  %v3730_v33 = vor.u32 %v4324_v23, %v3727_v24  ;;  %v3462_v41 = vor.u32 %v4259_v30, %v3461_v29  ;;  %v3429_v60 = vld [vmem:[#allocation4 + $0x3a8] sm:$0xf]  ;;  %v4251_v61 = vld [vmem:[#allocation4 + $0x3b4] sm:$0xf0] }
  0xe3   :  { %2207 = vmatpush.bf16.msrb.mxu2 %v3794_v36  ;;  %2221 = vmatpush.bf16.msrb.mxu3 %v3922_v37  ;;  %v3858_v34 = vor.u32 %v4356_v25, %v3855_v26  ;;  %v3045_v36 = vld [vmem:[#allocation4 + $0xa8] sm:$0xf]  ;;  %v4155_v37 = vld [vmem:[#allocation4 + $0xb4] sm:$0xf0] }
  0xe4   :  { %v3046_v48 = vor.u32 %v4155_v37, %v3045_v36  ;;  %v3285_v0 = vld [vmem:[#allocation4 + $0x288] sm:$0xf]  ;;  %v4215_v6 = vld [vmem:[#allocation4 + $0x294] sm:$0xf0] }
  0xe5   :  { %2181 = vmatpush.bf16.msrb.mxu0 %v3506_v44  ;;  %2195 = vmatpush.bf16.msrb.mxu1 %v3634_v45  ;;  %v3317_v44 = vld [vmem:[#allocation4 + $0x2c8] sm:$0xf]  ;;  %v4223_v45 = vld [vmem:[#allocation4 + $0x2d4] sm:$0xf0]  ;;  %v3286_v15 = vor.u32 %v4215_v6, %v3285_v0 }
  0xe6   :  { %v3318_v54 = vor.u32 %v4223_v45, %v3317_v44  ;;  %v3413_v7 = vld [vmem:[#allocation4 + $0x388] sm:$0xf]  ;;  %v4247_v10 = vld [vmem:[#allocation4 + $0x394] sm:$0xf0] }
  0xe7   :  { %2208 = vmatpush.bf16.msrb.mxu2 %v3778_v52  ;;  %2222 = vmatpush.bf16.msrb.mxu3 %v3906_v53  ;;  %v3029_v52 = vld [vmem:[#allocation4 + $0x88] sm:$0xf]  ;;  %v4151_v53 = vld [vmem:[#allocation4 + $0x94] sm:$0xf0]  ;;  %v3414_v16 = vor.u32 %v4247_v10, %v3413_v7 }
  0xe8   :  { %v3030_v62 = vor.u32 %v4151_v53, %v3029_v52  ;;  %v3125_v17 = vld [vmem:[#allocation4 + $0x148] sm:$0xf]  ;;  %v4211_v20 = vld [vmem:[#allocation4 + $0x274] sm:$0xf0] }
  0xe9   :  { %2182 = vmatpush.bf16.msrb.mxu0 %v3490_v58  ;;  %2196 = vmatpush.bf16.msrb.mxu1 %v3618_v59  ;;  %v3301_v58 = vld [vmem:[#allocation4 + $0x2a8] sm:$0xf]  ;;  %v4219_v59 = vld [vmem:[#allocation4 + $0x2b4] sm:$0xf0] }
  0xea   :  { %v3397_v23 = vld [vmem:[#allocation4 + $0x368] sm:$0xf]  ;;  %v4243_v24 = vld [vmem:[#allocation4 + $0x374] sm:$0xf0] }
  0xeb   :  { %2209 = vmatpush.bf16.msrb.mxu2 %v3762_v3  ;;  %2223 = vmatpush.bf16.msrb.mxu3 %v3890_v21  ;;  %v3302_v3 = vor.u32 %v4219_v59, %v3301_v58  ;;  %v3430_v21 = vor.u32 %v4251_v61, %v3429_v60  ;;  %v2981_v27 = vld [vmem:[#allocation4 + $0x28] sm:$0xf]  ;;  %v4139_v28 = vld [vmem:[#allocation4 + $0x34] sm:$0xf0]  ;;  %v3398_v30 = vor.u32 %v4243_v24, %v3397_v23 }
  0xec   :  { %v3381_v36 = vld [vmem:[#allocation4 + $0x348] sm:$0xf]  ;;  %v4239_v37 = vld [vmem:[#allocation4 + $0x354] sm:$0xf0] }
  0xed   :  { %2183 = vmatpush.bf16.msrb.mxu0 %v3474_v11  ;;  %2197 = vmatpush.bf16.msrb.mxu1 %v3602_v12  ;;  %v3014_v11 = vor.u32 %v4147_v35, %v3013_v2  ;;  %v3142_v12 = vor.u32 %v4179_v63, %v3141_v22  ;;  %v2965_v42 = vld [vmem:[#allocation4 + $0x8] sm:$0xf]  ;;  %v4135_v43 = vld [vmem:[#allocation4 + $0x14] sm:$0xf0]  ;;  %v3382_v46 = vor.u32 %v4239_v37, %v3381_v36 }
  0xee   :  { %v3093_v44 = vld [vmem:[#allocation4 + $0x108] sm:$0xf]  ;;  %v4167_v47 = vld [vmem:[#allocation4 + $0x114] sm:$0xf0]  ;;  %v2966_v58 = vor.u32 %v4135_v43, %v2965_v42 }
  0xef   :  { %2210 = vmatpush.bf16.msrb.mxu2 %v3746_v18  ;;  %2224 = vmatpush.bf16.msrb.mxu3 %v3874_v19  ;;  %v4175_v18 = vld [vmem:[#allocation4 + $0x154] sm:$0xf0]  ;;  %v3269_v19 = vld [vmem:[#allocation4 + $0x268] sm:$0xf]  ;;  %v3094_v59 = vor.u32 %v4167_v47, %v3093_v44 }
  0xf0   :  { %2184 = vmatmul.bf16.vlgmr.msrb.gmra.mxu0 %v4627_v38  ;;  %2198 = vmatmul.bf16.vlgmr.msrb.gmra.mxu1 %v4629_v39  ;;  %v3126_v26 = vor.u32 %v4175_v18, %v3125_v17  ;;  %v3270_v29 = vor.u32 %v4211_v20, %v3269_v19  ;;  %v3717_v52 = vld [vmem:[#allocation4 + $0x5e8] sm:$0xf]  ;;  %v4323_v53 = vld [vmem:[#allocation4 + $0x5f4] sm:$0xf0] }
  0xf1   :  { %2232 = vmatpush.bf16.msra.mxu0 %v3078_v13  ;;  %2246 = vmatpush.bf16.msra.mxu1 %v3206_v14  ;;  %v2997_v13 = vld [vmem:[#allocation4 + $0x48] sm:$0xf]  ;;  %v4143_v14 = vld [vmem:[#allocation4 + $0x54] sm:$0xf0]  ;;  %v3718_v61 = vor.u32 %v4323_v53, %v3717_v52 }
  0xf2   :  { %v2998_v25 = vor.u32 %v4143_v14, %v2997_v13  ;;  %v3365_v56 = vld [vmem:[#allocation4 + $0x328] sm:$0xf]  ;;  %v4235_v57 = vld [vmem:[#allocation4 + $0x334] sm:$0xf0] }
  0xf3   :  { %2211 = vmatpush.bf16.msrb.mxu2 %v3730_v33  ;;  %2225 = vmatpush.bf16.msrb.mxu3 %v3858_v34  ;;  %v3253_v33 = vld [vmem:[#allocation4 + $0x248] sm:$0xf]  ;;  %v4207_v34 = vld [vmem:[#allocation4 + $0x254] sm:$0xf0] }
  0xf4   :  { %v3254_v45 = vor.u32 %v4207_v34, %v3253_v33  ;;  %v3701_v2 = vld [vmem:[#allocation4 + $0x5c8] sm:$0xf]  ;;  %v4199_v63 = vld [vmem:[#allocation4 + $0x214] sm:$0xf0] }
  0xf5   :  { %2233 = vmatpush.bf16.msra.mxu0 %v3062_v31  ;;  %2247 = vmatpush.bf16.msra.mxu1 %v3190_v32  ;;  %v3109_v31 = vld [vmem:[#allocation4 + $0x128] sm:$0xf]  ;;  %v4171_v32 = vld [vmem:[#allocation4 + $0x134] sm:$0xf0] }
  0xf6   :  { %2212 = vmatmul.bf16.vlgmr.msrb.gmra.mxu2 %v4637_v4  ;;  %2226 = vmatmul.bf16.vlgmr.msrb.gmra.mxu3 %v4639_v5  ;;  %v3221_v22 = vld [vmem:[#allocation4 + $0x208] sm:$0xf]  ;;  %v4231_v6 = vld [vmem:[#allocation4 + $0x314] sm:$0xf0] }
  0xf7   :  { %2260 = vmatpush.bf16.msra.mxu2 %v3334_v40  ;;  %2274 = vmatpush.bf16.msra.mxu3 %v3462_v41  ;;  %v2982_v40 = vor.u32 %v4139_v28, %v2981_v27  ;;  %v3110_v41 = vor.u32 %v4171_v32, %v3109_v31  ;;  %v3349_v0 = vld [vmem:[#allocation4 + $0x308] sm:$0xf]  ;;  %v4355_v10 = vld [vmem:[#allocation4 + $0x6f4] sm:$0xf0] }
  0xf8   :  { %v3845_v7 = vld [vmem:[#allocation4 + $0x6e8] sm:$0xf]  ;;  %v4283_v18 = vld [vmem:[#allocation4 + $0x4b4] sm:$0xf0] }
  0xf9   :  { %2234 = vmatpush.bf16.msra.mxu0 %v3046_v48  ;;  %2248 = vmatpush.bf16.msra.mxu1 %v3174_v49  ;;  %v3589_v48 = vld [vmem:[#allocation4 + $0x4e8] sm:$0xf]  ;;  %v4291_v49 = vld [vmem:[#allocation4 + $0x4f4] sm:$0xf0]  ;;  %v3846_v19 = vor.u32 %v4355_v10, %v3845_v7 }
  0xfa   :  { %v3590_v60 = vor.u32 %v4291_v49, %v3589_v48  ;;  %v3557_v17 = vld [vmem:[#allocation4 + $0x4a8] sm:$0xf]  ;;  %v4315_v24 = vld [vmem:[#allocation4 + $0x5b4] sm:$0xf0] }
  0xfb   :  { %2261 = vmatpush.bf16.msra.mxu2 %v3318_v54  ;;  %2275 = vmatpush.bf16.msra.mxu3 %v3446_v55  ;;  %v3237_v54 = vld [vmem:[#allocation4 + $0x228] sm:$0xf]  ;;  %v4203_v55 = vld [vmem:[#allocation4 + $0x234] sm:$0xf0] }
  0xfc   :  { %v3238_v35 = vor.u32 %v4203_v55, %v3237_v54  ;;  %v3685_v23 = vld [vmem:[#allocation4 + $0x5a8] sm:$0xf]  ;;  %v4383_v28 = vld [vmem:[#allocation4 + $0x7d4] sm:$0xf0] }
  0xfd   :  { %2235 = vmatpush.bf16.msra.mxu0 %v3030_v62  ;;  %2249 = vmatpush.bf16.msra.mxu1 %v3158_v1  ;;  %v3573_v62 = vld [vmem:[#allocation4 + $0x4c8] sm:$0xf]  ;;  %v4287_v1 = vld [vmem:[#allocation4 + $0x4d4] sm:$0xf0] }
  0xfe   :  { %v3574_v13 = vor.u32 %v4287_v1, %v3573_v62  ;;  %v3957_v27 = vld [vmem:[#allocation4 + $0x7c8] sm:$0xf]  ;;  %v4279_v32 = vld [vmem:[#allocation4 + $0x494] sm:$0xf0] }
  0xff   :  { %2262 = vmatpush.bf16.msra.mxu2 %v3302_v3  ;;  %2276 = vmatpush.bf16.msra.mxu3 %v3430_v21  ;;  %v3366_v3 = vor.u32 %v4235_v57, %v3365_v56  ;;  %v4319_v21 = vld [vmem:[#allocation4 + $0x5d4] sm:$0xf0]  ;;  %v3541_v31 = vld [vmem:[#allocation4 + $0x488] sm:$0xf]  ;;  %v3958_v34 = vor.u32 %v4383_v28, %v3957_v27 }
 0x100   :  { %v3702_v14 = vor.u32 %v4319_v21, %v3701_v2  ;;  %v3669_v36 = vld [vmem:[#allocation4 + $0x588] sm:$0xf]  ;;  %v4311_v37 = vld [vmem:[#allocation4 + $0x594] sm:$0xf0]  ;;  %v3542_v44 = vor.u32 %v4279_v32, %v3541_v31  ;;  %v4193_v31 = vld [vmem:[#allocation4 + $0x1ec] sm:$0xf] }
 0x101   :  { %2236 = vmatpush.bf16.msra.mxu0 %v3014_v11  ;;  %2250 = vmatpush.bf16.msra.mxu1 %v3142_v12  ;;  %v3973_v11 = vld [vmem:[#allocation4 + $0x7e8] sm:$0xf]  ;;  %v4387_v12 = vld [vmem:[#allocation4 + $0x7f4] sm:$0xf0]  ;;  %v3207_v32 = vld [vmem:[#allocation4 + $0x1f8] sm:$0xf0] }
 0x102   :  { %v3974_v20 = vor.u32 %v4387_v12, %v3973_v11  ;;  %v3941_v42 = vld [vmem:[#allocation4 + $0x7a8] sm:$0xf]  ;;  %v4379_v43 = vld [vmem:[#allocation4 + $0x7b4] sm:$0xf0] }
 0x103   :  { %2263 = vmatpush.bf16.msra.mxu2 %v3286_v15  ;;  %2277 = vmatpush.bf16.msra.mxu3 %v3414_v16  ;;  %v3222_v15 = vor.u32 %v4199_v63, %v3221_v22  ;;  %v3350_v16 = vor.u32 %v4231_v6, %v3349_v0  ;;  %v4275_v47 = vld [vmem:[#allocation4 + $0x474] sm:$0xf0]  ;;  %v3942_v49 = vor.u32 %v4379_v43, %v3941_v42  ;;  %v3653_v52 = vld [vmem:[#allocation4 + $0x568] sm:$0xf] }
 0x104   :  { %v4307_v53 = vld [vmem:[#allocation4 + $0x574] sm:$0xf0]  ;;  %v3797_v54 = vld [vmem:[#allocation4 + $0x688] sm:$0xf]  ;;  %v3210_v43 = vor.u32 %v4193_v31, %v3207_v32  ;;  %v4177_v32 = vld [vmem:[#allocation4 + $0x16c] sm:$0xf] }
 0x105   :  { %2237 = vmatpush.bf16.msra.mxu0 %v2998_v25  ;;  %2251 = vmatpush.bf16.msra.mxu1 %v3126_v26  ;;  %v3829_v25 = vld [vmem:[#allocation4 + $0x6c8] sm:$0xf]  ;;  %v4351_v26 = vld [vmem:[#allocation4 + $0x6d4] sm:$0xf0] }
 0x106   :  { %v3830_v33 = vor.u32 %v4351_v26, %v3829_v25  ;;  %v4343_v55 = vld [vmem:[#allocation4 + $0x694] sm:$0xf0]  ;;  %v3925_v56 = vld [vmem:[#allocation4 + $0x788] sm:$0xf] }
 0x107   :  { %2264 = vmatpush.bf16.msra.mxu2 %v3270_v29  ;;  %2278 = vmatpush.bf16.msra.mxu3 %v3398_v30  ;;  %v3558_v29 = vor.u32 %v4283_v18, %v3557_v17  ;;  %v3686_v30 = vor.u32 %v4315_v24, %v3685_v23  ;;  %v4375_v57 = vld [vmem:[#allocation4 + $0x794] sm:$0xf0]  ;;  %v3798_v62 = vor.u32 %v4343_v55, %v3797_v54  ;;  %v3637_v2 = vld [vmem:[#allocation4 + $0x548] sm:$0xf] }
 0x108   :  { %v3926_v1 = vor.u32 %v4375_v57, %v3925_v56  ;;  %v4339_v21 = vld [vmem:[#allocation4 + $0x674] sm:$0xf0]  ;;  %v3909_v22 = vld [vmem:[#allocation4 + $0x768] sm:$0xf]  ;;  %v4225_v56 = vld [vmem:[#allocation4 + $0x2ec] sm:$0xf] }
 0x109   :  { %2238 = vmatpush.bf16.msra.mxu0 %v2982_v40  ;;  %2252 = vmatpush.bf16.msra.mxu1 %v3110_v41  ;;  %v3813_v40 = vld [vmem:[#allocation4 + $0x6a8] sm:$0xf]  ;;  %v4347_v41 = vld [vmem:[#allocation4 + $0x6b4] sm:$0xf0]  ;;  %v3335_v57 = vld [vmem:[#allocation4 + $0x2f8] sm:$0xf0] }
 0x10a   :  { %v3814_v48 = vor.u32 %v4347_v41, %v3813_v40  ;;  %v4371_v63 = vld [vmem:[#allocation4 + $0x774] sm:$0xf0]  ;;  %v3493_v7 = vld [vmem:[#allocation4 + $0x428] sm:$0xf] }
 0x10b   :  { %2265 = vmatpush.bf16.msra.mxu2 %v3254_v45  ;;  %2279 = vmatpush.bf16.msra.mxu3 %v3382_v46  ;;  %v3670_v45 = vor.u32 %v4311_v37, %v3669_v36  ;;  %v3525_v46 = vld [vmem:[#allocation4 + $0x468] sm:$0xf]  ;;  %v4267_v10 = vld [vmem:[#allocation4 + $0x434] sm:$0xf0]  ;;  %v3910_v12 = vor.u32 %v4371_v63, %v3909_v22  ;;  %v4185_v22 = vld [vmem:[#allocation4 + $0x1ac] sm:$0xf] }
 0x10c   :  { %v3893_v17 = vld [vmem:[#allocation4 + $0x748] sm:$0xf]  ;;  %v4367_v18 = vld [vmem:[#allocation4 + $0x754] sm:$0xf0]  ;;  %v3175_v63 = vld [vmem:[#allocation4 + $0x1b8] sm:$0xf0] }
 0x10d   :  { %2239 = vmatpush.bf16.msra.mxu0 %v2966_v58  ;;  %2253 = vmatpush.bf16.msra.mxu1 %v3094_v59  ;;  %v3526_v58 = vor.u32 %v4275_v47, %v3525_v46  ;;  %v3654_v59 = vor.u32 %v4307_v53, %v3653_v52  ;;  %v3477_v23 = vld [vmem:[#allocation4 + $0x408] sm:$0xf]  ;;  %v4263_v24 = vld [vmem:[#allocation4 + $0x414] sm:$0xf0]  ;;  %v3894_v27 = vor.u32 %v4367_v18, %v3893_v17  ;;  %v4189_v46 = vld [vmem:[#allocation4 + $0x1cc] sm:$0xf] }
 0x10e   :  { %v3605_v25 = vld [vmem:[#allocation4 + $0x508] sm:$0xf]  ;;  %v4295_v28 = vld [vmem:[#allocation4 + $0x514] sm:$0xf0]  ;;  %v3478_v40 = vor.u32 %v4263_v24, %v3477_v23  ;;  %v4181_v17 = vld [vmem:[#allocation4 + $0x18c] sm:$0xf] }
 0x10f   :  { %2266 = vmatpush.bf16.msra.mxu2 %v3238_v35  ;;  %2280 = vmatpush.bf16.msra.mxu3 %v3366_v3  ;;  %v4303_v35 = vld [vmem:[#allocation4 + $0x554] sm:$0xf0]  ;;  %v3781_v3 = vld [vmem:[#allocation4 + $0x668] sm:$0xf]  ;;  %v3606_v41 = vor.u32 %v4295_v28, %v3605_v25  ;;  %v3159_v18 = vld [vmem:[#allocation4 + $0x198] sm:$0xf0] }
 0x110   :  { %2240 = vmatmul.bf16.vlgmr.msra.gmra.mxu0 %v4601_v8  ;;  %2254 = vmatmul.bf16.vlgmr.msra.gmra.mxu1 %v4603_v9  ;;  %v3638_v6 = vor.u32 %v4303_v35, %v3637_v2  ;;  %v3782_v11 = vor.u32 %v4339_v21, %v3781_v3  ;;  %v3877_v36 = vld [vmem:[#allocation4 + $0x728] sm:$0xf]  ;;  %v4363_v37 = vld [vmem:[#allocation4 + $0x734] sm:$0xf0]  ;;  %v4153_v2 = vld [vmem:[#allocation4 + $0xac] sm:$0xf]  ;;  %v3338_v3 = vor.u32 %v4225_v56, %v3335_v57 }
 0x111   :  { %2288 = vmatpush.bf16.msrb.mxu0 %v3590_v60  ;;  %2302 = vmatpush.bf16.msrb.mxu1 %v3718_v61  ;;  %v3509_v60 = vld [vmem:[#allocation4 + $0x448] sm:$0xf]  ;;  %v4271_v61 = vld [vmem:[#allocation4 + $0x454] sm:$0xf0]  ;;  %v3047_v35 = vld [vmem:[#allocation4 + $0xb8] sm:$0xf0] }
 0x112   :  { %v3510_v0 = vor.u32 %v4271_v61, %v3509_v60  ;;  %v3733_v52 = vld [vmem:[#allocation4 + $0x608] sm:$0xf]  ;;  %v4327_v53 = vld [vmem:[#allocation4 + $0x614] sm:$0xf0]  ;;  %v4249_v23 = vld [vmem:[#allocation4 + $0x3ac] sm:$0xf] }
 0x113   :  { %2267 = vmatpush.bf16.msra.mxu2 %v3222_v15  ;;  %2281 = vmatpush.bf16.msra.mxu3 %v3350_v16  ;;  %v3765_v15 = vld [vmem:[#allocation4 + $0x648] sm:$0xf]  ;;  %v4335_v16 = vld [vmem:[#allocation4 + $0x654] sm:$0xf0]  ;;  %v3431_v24 = vld [vmem:[#allocation4 + $0x3b8] sm:$0xf0] }
 0x114   :  { %v3766_v26 = vor.u32 %v4335_v16, %v3765_v15  ;;  %v3861_v54 = vld [vmem:[#allocation4 + $0x708] sm:$0xf]  ;;  %v4359_v55 = vld [vmem:[#allocation4 + $0x714] sm:$0xf0]  ;;  %v3015_v28 = vld [vmem:[#allocation4 + $0x78] sm:$0xf0]  ;;  %v3434_v31 = vor.u32 %v4249_v23, %v3431_v24 }
 0x115   :  { %2289 = vmatpush.bf16.msrb.mxu0 %v3574_v13  ;;  %2303 = vmatpush.bf16.msrb.mxu1 %v3702_v14  ;;  %v3621_v13 = vld [vmem:[#allocation4 + $0x528] sm:$0xf]  ;;  %v4299_v14 = vld [vmem:[#allocation4 + $0x534] sm:$0xf0]  ;;  %v3239_v23 = vld [vmem:[#allocation4 + $0x238] sm:$0xf0] }
 0x116   :  { %2268 = vmatmul.bf16.vlgmr.msra.gmra.mxu2 %v4615_v50  ;;  %2282 = vmatmul.bf16.vlgmr.msra.gmra.mxu3 %v4617_v51  ;;  %v4233_v24 = vld [vmem:[#allocation4 + $0x32c] sm:$0xf] }
 0x117   :  { %2316 = vmatpush.bf16.msrb.mxu2 %v3846_v19  ;;  %2330 = vmatpush.bf16.msrb.mxu3 %v3974_v20  ;;  %v3494_v19 = vor.u32 %v4267_v10, %v3493_v7  ;;  %v3622_v20 = vor.u32 %v4299_v14, %v3621_v13  ;;  %v4253_v7 = vld [vmem:[#allocation4 + $0x3cc] sm:$0xf]  ;;  %v3447_v10 = vld [vmem:[#allocation4 + $0x3d8] sm:$0xf0] }
 0x118   :  { %v4149_v13 = vld [vmem:[#allocation4 + $0x8c] sm:$0xf]  ;;  %v3031_v14 = vld [vmem:[#allocation4 + $0x98] sm:$0xf0]  ;;  %v3450_v16 = vor.u32 %v4253_v7, %v3447_v10 }
 0x119   :  { %2290 = vmatpush.bf16.msrb.mxu0 %v3558_v29  ;;  %2304 = vmatpush.bf16.msrb.mxu1 %v3686_v30  ;;  %v4161_v29 = vld [vmem:[#allocation4 + $0xec] sm:$0xf]  ;;  %v3079_v30 = vld [vmem:[#allocation4 + $0xf8] sm:$0xf0]  ;;  %v3034_v25 = vor.u32 %v4149_v13, %v3031_v14 }
 0x11a   :  { %v3082_v42 = vor.u32 %v4161_v29, %v3079_v30  ;;  %v4133_v10 = vld [vmem:[#allocation4 + $0xc] sm:$0xf] }
 0x11b   :  { %2317 = vmatpush.bf16.msrb.mxu2 %v3830_v33  ;;  %2331 = vmatpush.bf16.msrb.mxu3 %v3958_v34  ;;  %v3749_v33 = vld [vmem:[#allocation4 + $0x628] sm:$0xf]  ;;  %v4331_v34 = vld [vmem:[#allocation4 + $0x634] sm:$0xf0] }
 0x11c   :  { %v3750_v47 = vor.u32 %v4331_v34, %v3749_v33  ;;  %v3143_v33 = vld [vmem:[#allocation4 + $0x178] sm:$0xf0]  ;;  %v4213_v34 = vld [vmem:[#allocation4 + $0x28c] sm:$0xf] }
 0x11d   :  { %2291 = vmatpush.bf16.msrb.mxu0 %v3542_v44  ;;  %2305 = vmatpush.bf16.msrb.mxu1 %v3670_v45  ;;  %v4157_v44 = vld [vmem:[#allocation4 + $0xcc] sm:$0xf]  ;;  %v3063_v45 = vld [vmem:[#allocation4 + $0xd8] sm:$0xf0] }
 0x11e   :  { %v3066_v60 = vor.u32 %v4157_v44, %v3063_v45  ;;  %v2999_v44 = vld [vmem:[#allocation4 + $0x58] sm:$0xf0] }
 0x11f   :  { %2318 = vmatpush.bf16.msrb.mxu2 %v3814_v48  ;;  %2332 = vmatpush.bf16.msrb.mxu3 %v3942_v49  ;;  %v3878_v48 = vor.u32 %v4363_v37, %v3877_v36  ;;  %v3191_v49 = vld [vmem:[#allocation4 + $0x1d8] sm:$0xf0]  ;;  %v4245_v37 = vld [vmem:[#allocation4 + $0x38c] sm:$0xf] }
 0x120   :  { %v3194_v61 = vor.u32 %v4189_v46, %v3191_v49  ;;  %v3287_v36 = vld [vmem:[#allocation4 + $0x298] sm:$0xf0]  ;;  %v4209_v49 = vld [vmem:[#allocation4 + $0x26c] sm:$0xf] }
 0x121   :  { %2292 = vmatpush.bf16.msrb.mxu0 %v3526_v58  ;;  %2306 = vmatpush.bf16.msrb.mxu1 %v3654_v59  ;;  %v4257_v58 = vld [vmem:[#allocation4 + $0x3ec] sm:$0xf]  ;;  %v3463_v59 = vld [vmem:[#allocation4 + $0x3f8] sm:$0xf0]  ;;  %v3290_v45 = vor.u32 %v4213_v34, %v3287_v36 }
 0x122   :  { %v3466_v21 = vor.u32 %v4257_v58, %v3463_v59  ;;  %v4137_v58 = vld [vmem:[#allocation4 + $0x2c] sm:$0xf]  ;;  %v2983_v59 = vld [vmem:[#allocation4 + $0x38] sm:$0xf0] }
 0x123   :  { %2319 = vmatpush.bf16.msrb.mxu2 %v3798_v62  ;;  %2333 = vmatpush.bf16.msrb.mxu3 %v3926_v1  ;;  %v3734_v62 = vor.u32 %v4327_v53, %v3733_v52  ;;  %v3862_v1 = vor.u32 %v4359_v55, %v3861_v54  ;;  %v3271_v52 = vld [vmem:[#allocation4 + $0x278] sm:$0xf0]  ;;  %v4241_v53 = vld [vmem:[#allocation4 + $0x36c] sm:$0xf] }
 0x124   :  { %v3399_v54 = vld [vmem:[#allocation4 + $0x378] sm:$0xf0] }
 0x125   :  { %2293 = vmatpush.bf16.msrb.mxu0 %v3510_v0  ;;  %2307 = vmatpush.bf16.msrb.mxu1 %v3638_v6  ;;  %v4221_v0 = vld [vmem:[#allocation4 + $0x2cc] sm:$0xf]  ;;  %v3319_v6 = vld [vmem:[#allocation4 + $0x2d8] sm:$0xf0] }
 0x126   :  { %v3322_v15 = vor.u32 %v4221_v0, %v3319_v6  ;;  %v2986_v6 = vor.u32 %v4137_v58, %v2983_v59  ;;  %v4281_v59 = vld [vmem:[#allocation4 + $0x4ac] sm:$0xf] }
 0x127   :  { %2320 = vmatpush.bf16.msrb.mxu2 %v3782_v11  ;;  %2334 = vmatpush.bf16.msrb.mxu3 %v3910_v12  ;;  %v3050_v11 = vor.u32 %v4153_v2, %v3047_v35  ;;  %v3178_v12 = vor.u32 %v4185_v22, %v3175_v63  ;;  %v4205_v2 = vld [vmem:[#allocation4 + $0x24c] sm:$0xf]  ;;  %v3255_v35 = vld [vmem:[#allocation4 + $0x258] sm:$0xf0] }
 0x128   :  { %v3258_v13 = vor.u32 %v4205_v2, %v3255_v35  ;;  %v3687_v2 = vld [vmem:[#allocation4 + $0x5b8] sm:$0xf0]  ;;  %v4349_v35 = vld [vmem:[#allocation4 + $0x6cc] sm:$0xf] }
 0x129   :  { %2294 = vmatpush.bf16.msrb.mxu0 %v3494_v19  ;;  %2308 = vmatpush.bf16.msrb.mxu1 %v3622_v20  ;;  %v4217_v19 = vld [vmem:[#allocation4 + $0x2ac] sm:$0xf]  ;;  %v3303_v20 = vld [vmem:[#allocation4 + $0x2b8] sm:$0xf0] }
 0x12a   :  { %v3306_v30 = vor.u32 %v4217_v19, %v3303_v20  ;;  %v3719_v19 = vld [vmem:[#allocation4 + $0x5f8] sm:$0xf0]  ;;  %v4201_v20 = vld [vmem:[#allocation4 + $0x22c] sm:$0xf] }
 0x12b   :  { %2321 = vmatpush.bf16.msrb.mxu2 %v3766_v26  ;;  %2335 = vmatpush.bf16.msrb.mxu3 %v3894_v27  ;;  %v3162_v26 = vor.u32 %v4181_v17, %v3159_v18  ;;  %v4145_v27 = vld [vmem:[#allocation4 + $0x6c] sm:$0xf]  ;;  %v3591_v17 = vld [vmem:[#allocation4 + $0x4f8] sm:$0xf0]  ;;  %v3242_v36 = vor.u32 %v4201_v20, %v3239_v23 }
 0x12c   :  { %v4659_v29 = vpop.f32.mrf.mxu0  ;;  %v4661_v55 = vpop.f32.mrf.mxu1  ;;  %v4321_v18 = vld [vmem:[#allocation4 + $0x5ec] sm:$0xf] }
 0x12d   :  { %2295 = vmatpush.bf16.msrb.mxu0 %v3478_v40  ;;  %2309 = vmatpush.bf16.msrb.mxu1 %v3606_v41  ;;  %v3415_v40 = vld [vmem:[#allocation4 + $0x398] sm:$0xf0]  ;;  %v3018_v41 = vor.u32 %v4145_v27, %v3015_v28 }
 0x12e   :  { %v3418_v46 = vor.u32 %v4245_v37, %v3415_v40  ;;  %v3703_v40 = vld [vmem:[#allocation4 + $0x5d8] sm:$0xf0] }
 0x12f   :  { %2322 = vmatpush.bf16.msrb.mxu2 %v3750_v47  ;;  %2336 = vmatpush.bf16.msrb.mxu3 %v3878_v48  ;;  %v4173_v47 = vld [vmem:[#allocation4 + $0x14c] sm:$0xf]  ;;  %v3127_v48 = vld [vmem:[#allocation4 + $0x158] sm:$0xf0] }
 0x130   :  { %2296 = vmatmul.bf16.vlgmr.msrb.gmra.mxu0 %v4627_v38  ;;  %2310 = vmatmul.bf16.vlgmr.msrb.gmra.mxu1 %v4629_v39  ;;  %v3130_v57 = vor.u32 %v4173_v47, %v3127_v48  ;;  %v4385_v47 = vld [vmem:[#allocation4 + $0x7ec] sm:$0xf]  ;;  %v3975_v48 = vld [vmem:[#allocation4 + $0x7f8] sm:$0xf0] }
 0x131   :  { %2344 = vmatpush.bf16.msra.mxu0 %v3082_v42  ;;  %2358 = vmatpush.bf16.msra.mxu1 %v3210_v43  ;;  %v3146_v42 = vor.u32 %v4177_v32, %v3143_v33  ;;  %v4141_v43 = vld [vmem:[#allocation4 + $0x4c] sm:$0xf]  ;;  %v3575_v32 = vld [vmem:[#allocation4 + $0x4d8] sm:$0xf0] }
 0x132   :  { %v3002_v56 = vor.u32 %v4141_v43, %v2999_v44  ;;  %v4317_v33 = vld [vmem:[#allocation4 + $0x5cc] sm:$0xf]  ;;  %v3351_v44 = vld [vmem:[#allocation4 + $0x318] sm:$0xf0] }
 0x133   :  { %2323 = vmatpush.bf16.msrb.mxu2 %v3734_v62  ;;  %2337 = vmatpush.bf16.msrb.mxu3 %v3862_v1  ;;  %v4169_v62 = vld [vmem:[#allocation4 + $0x12c] sm:$0xf]  ;;  %v3111_v1 = vld [vmem:[#allocation4 + $0x138] sm:$0xf0] }
 0x134   :  { %v4663_v22 = vpop.f32.mrf.mxu0  ;;  %v3114_v7 = vor.u32 %v4169_v62, %v3111_v1  ;;  %v4669_v34 = vpop.f32.mrf.mxu1  ;;  %v4229_v43 = vld [vmem:[#allocation4 + $0x30c] sm:$0xf]  ;;  %v3978_v62 = vor.u32 %v4385_v47, %v3975_v48  ;;  %v3639_v47 = vld [vmem:[#allocation4 + $0x558] sm:$0xf0] }
 0x135   :  { %2345 = vmatpush.bf16.msra.mxu0 %v3066_v60  ;;  %2359 = vmatpush.bf16.msra.mxu1 %v3194_v61  ;;  %v3274_v60 = vor.u32 %v4209_v49, %v3271_v52  ;;  %v3402_v61 = vor.u32 %v4241_v53, %v3399_v54  ;;  %v3706_v53 = vor.u32 %v4317_v33, %v3703_v40  ;;  %v4313_v1 = vld [vmem:[#allocation4 + $0x5ac] sm:$0xf] }
 0x136   :  { %2324 = vmatmul.bf16.vlgmr.msrb.gmra.mxu2 %v4637_v4  ;;  %2338 = vmatmul.bf16.vlgmr.msrb.gmra.mxu3 %v4639_v5  ;;  %v3354_v58 = vor.u32 %v4229_v43, %v3351_v44  ;;  %v3511_v43 = vld [vmem:[#allocation4 + $0x458] sm:$0xf0]  ;;  %v4337_v48 = vld [vmem:[#allocation4 + $0x66c] sm:$0xf] }
 0x137   :  { %2372 = vmatpush.bf16.msra.mxu2 %v3338_v3  ;;  %2386 = vmatpush.bf16.msra.mxu3 %v3466_v21  ;;  %v4237_v3 = vld [vmem:[#allocation4 + $0x34c] sm:$0xf]  ;;  %v3383_v21 = vld [vmem:[#allocation4 + $0x358] sm:$0xf0] }
 0x138   :  { %v3386_v14 = vor.u32 %v4237_v3, %v3383_v21  ;;  %v3831_v3 = vld [vmem:[#allocation4 + $0x6d8] sm:$0xf0]  ;;  %v4381_v21 = vld [vmem:[#allocation4 + $0x7cc] sm:$0xf] }
 0x139   :  { %2346 = vmatpush.bf16.msra.mxu0 %v3050_v11  ;;  %2360 = vmatpush.bf16.msra.mxu1 %v3178_v12  ;;  %v4665_v63 = vpop.f32.mrf.mxu2  ;;  %v4667_v0 = vpop.f32.mrf.mxu3  ;;  %v2967_v11 = vld [vmem:[#allocation4 + $0x18] sm:$0xf0]  ;;  %v4165_v12 = vld [vmem:[#allocation4 + $0x10c] sm:$0xf] }
 0x13b   :  { %2373 = vmatpush.bf16.msra.mxu2 %v3322_v15  ;;  %2387 = vmatpush.bf16.msra.mxu3 %v3450_v16  ;;  %v3095_v15 = vld [vmem:[#allocation4 + $0x118] sm:$0xf0]  ;;  %v4289_v16 = vld [vmem:[#allocation4 + $0x4ec] sm:$0xf] }
 0x13c   :  { %v3098_v27 = vor.u32 %v4165_v12, %v3095_v15  ;;  %v3594_v28 = vor.u32 %v4289_v16, %v3591_v17  ;;  %v3543_v12 = vld [vmem:[#allocation4 + $0x498] sm:$0xf0]  ;;  %v4345_v15 = vld [vmem:[#allocation4 + $0x6ac] sm:$0xf] }
 0x13d   :  { %2347 = vmatpush.bf16.msra.mxu0 %v3034_v25  ;;  %2361 = vmatpush.bf16.msra.mxu1 %v3162_v26  ;;  %v3367_v25 = vld [vmem:[#allocation4 + $0x338] sm:$0xf0]  ;;  %v2970_v26 = vor.u32 %v4133_v10, %v2967_v11  ;;  %v4671_v49 = vpop.f32.mrf.mxu0  ;;  %v3690_v10 = vor.u32 %v4313_v1, %v3687_v2  ;;  %v4277_v11 = vld [vmem:[#allocation4 + $0x48c] sm:$0xf]  ;;  %v4679_v16 = vpop.f32.mrf.mxu1 }
 0x13e   :  { %v3370_v37 = vor.u32 %v4233_v24, %v3367_v25  ;;  %v3815_v17 = vld [vmem:[#allocation4 + $0x6b8] sm:$0xf0]  ;;  %v3546_v20 = vor.u32 %v4277_v11, %v3543_v12  ;;  %v4273_v24 = vld [vmem:[#allocation4 + $0x46c] sm:$0xf] }
 0x13f   :  { %2374 = vmatpush.bf16.msra.mxu2 %v3306_v30  ;;  %2388 = vmatpush.bf16.msra.mxu3 %v3434_v31  ;;  %v3722_v30 = vor.u32 %v4321_v18, %v3719_v19  ;;  %v4285_v31 = vld [vmem:[#allocation4 + $0x4cc] sm:$0xf]  ;;  %v3943_v19 = vld [vmem:[#allocation4 + $0x7b8] sm:$0xf0] }
 0x140   :  { %v3578_v52 = vor.u32 %v4285_v31, %v3575_v32  ;;  %v4377_v18 = vld [vmem:[#allocation4 + $0x7ac] sm:$0xf]  ;;  %v3527_v25 = vld [vmem:[#allocation4 + $0x478] sm:$0xf0] }
 0x141   :  { %2348 = vmatpush.bf16.msra.mxu0 %v3018_v41  ;;  %2362 = vmatpush.bf16.msra.mxu1 %v3146_v42  ;;  %v4197_v41 = vld [vmem:[#allocation4 + $0x20c] sm:$0xf]  ;;  %v3223_v42 = vld [vmem:[#allocation4 + $0x218] sm:$0xf0]  ;;  %v4673_v54 = vpop.f32.mrf.mxu2  ;;  %v3530_v40 = vor.u32 %v4273_v24, %v3527_v25 }
 0x142   :  { %v3655_v31 = vld [vmem:[#allocation4 + $0x578] sm:$0xf0]  ;;  %v4341_v32 = vld [vmem:[#allocation4 + $0x68c] sm:$0xf] }
 0x143   :  { %2375 = vmatpush.bf16.msra.mxu2 %v3290_v45  ;;  %2389 = vmatpush.bf16.msra.mxu3 %v3418_v46  ;;  %v4353_v45 = vld [vmem:[#allocation4 + $0x6ec] sm:$0xf]  ;;  %v3847_v46 = vld [vmem:[#allocation4 + $0x6f8] sm:$0xf0] }
 0x144   :  { %v3751_v24 = vld [vmem:[#allocation4 + $0x638] sm:$0xf0]  ;;  %v4361_v25 = vld [vmem:[#allocation4 + $0x72c] sm:$0xf] }
 0x145   :  { %2349 = vmatpush.bf16.msra.mxu0 %v3002_v56  ;;  %2363 = vmatpush.bf16.msra.mxu1 %v3130_v57  ;;  %v4675_v56 = vpop.f32.mrf.mxu3  ;;  %v3226_v57 = vor.u32 %v4197_v41, %v3223_v42  ;;  %v4269_v42 = vld [vmem:[#allocation4 + $0x44c] sm:$0xf] }
 0x147   :  { %2376 = vmatpush.bf16.msra.mxu2 %v3274_v60  ;;  %2390 = vmatpush.bf16.msra.mxu3 %v3402_v61  ;;  %v3559_v60 = vld [vmem:[#allocation4 + $0x4b8] sm:$0xf0]  ;;  %v3850_v61 = vor.u32 %v4353_v45, %v3847_v46  ;;  %v4301_v46 = vld [vmem:[#allocation4 + $0x54c] sm:$0xf] }
 0x149   :  { %2350 = vmatpush.bf16.msra.mxu0 %v2986_v6  ;;  %2364 = vmatpush.bf16.msra.mxu1 %v3114_v7  ;;  %v3959_v6 = vld [vmem:[#allocation4 + $0x7d8] sm:$0xf0]  ;;  %v3562_v7 = vor.u32 %v4281_v59, %v3559_v60  ;;  %v4685_v33 = vpop.f32.mrf.mxu2  ;;  %v3514_v59 = vor.u32 %v4269_v42, %v3511_v43  ;;  %v3642_v60 = vor.u32 %v4301_v46, %v3639_v47 }
 0x14a   :  { %v4395_v42 = vld [vmem:[#allocation6 + $0x38] sm:$0xff] }
 0x14b   :  { %2377 = vmatpush.bf16.msra.mxu2 %v3258_v13  ;;  %2391 = vmatpush.bf16.msra.mxu3 %v3386_v14  ;;  %v4309_v13 = vld [vmem:[#allocation4 + $0x58c] sm:$0xf]  ;;  %v3671_v14 = vld [vmem:[#allocation4 + $0x598] sm:$0xf0] }
 0x14c   :  { %v3674_v23 = vor.u32 %v4309_v13, %v3671_v14  ;;  %v4261_v14 = vld [vmem:[#allocation4 + $0x40c] sm:$0xf]  ;;  %v4403_v43 = vld [vmem:[#allocation6 + $0x78] sm:$0xff] }
 0x14d   :  { %2351 = vmatpush.bf16.msra.mxu0 %v2970_v26  ;;  %2365 = vmatpush.bf16.msra.mxu1 %v3098_v27  ;;  %v4683_v26 = vpop.f32.mrf.mxu0  ;;  %v3818_v27 = vor.u32 %v4345_v15, %v3815_v17  ;;  %v3479_v15 = vld [vmem:[#allocation4 + $0x418] sm:$0xf0] }
 0x14f   :  { %2378 = vmatpush.bf16.msra.mxu2 %v3242_v36  ;;  %2392 = vmatpush.bf16.msra.mxu3 %v3370_v37  ;;  %v4373_v36 = vld [vmem:[#allocation4 + $0x78c] sm:$0xf]  ;;  %v3927_v37 = vld [vmem:[#allocation4 + $0x798] sm:$0xf0] }
 0x150   :  { %2352 = vmatmul.bf16.vlgmr.msra.gmra.mxu0 %v4601_v8  ;;  %2366 = vmatmul.bf16.vlgmr.msra.gmra.mxu1 %v4603_v9  ;;  %v3834_v8 = vor.u32 %v4349_v35, %v3831_v3  ;;  %v3962_v9 = vor.u32 %v4381_v21, %v3959_v6  ;;  %v3930_v45 = vor.u32 %v4373_v36, %v3927_v37  ;;  %v4297_v35 = vld [vmem:[#allocation4 + $0x52c] sm:$0xf]  ;;  %v3623_v3 = vld [vmem:[#allocation4 + $0x538] sm:$0xf0] }
 0x151   :  { %2400 = vmatpush.bf16.msrb.mxu0 %v3594_v28  ;;  %2414 = vmatpush.bf16.msrb.mxu1 %v3722_v30  ;;  %v3946_v28 = vor.u32 %v4377_v18, %v3943_v19  ;;  %v4305_v30 = vld [vmem:[#allocation4 + $0x56c] sm:$0xf]  ;;  %v3767_v6 = vld [vmem:[#allocation4 + $0x658] sm:$0xf0]  ;;  %v4691_v12 = vpop.f32.mrf.mxu2  ;;  %v3626_v13 = vor.u32 %v4297_v35, %v3623_v3 }
 0x152   :  { %v3658_v41 = vor.u32 %v4305_v30, %v3655_v31  ;;  %v4333_v21 = vld [vmem:[#allocation4 + $0x64c] sm:$0xf]  ;;  %v3735_v36 = vld [vmem:[#allocation4 + $0x618] sm:$0xf0] }
 0x153   :  { %2379 = vmatpush.bf16.msra.mxu2 %v3226_v57  ;;  %2393 = vmatpush.bf16.msra.mxu3 %v3354_v58  ;;  %v3911_v57 = vld [vmem:[#allocation4 + $0x778] sm:$0xf0]  ;;  %v4689_v58 = vpop.f32.mrf.mxu1  ;;  %v3770_v17 = vor.u32 %v4333_v21, %v3767_v6  ;;  %v4293_v19 = vld [vmem:[#allocation4 + $0x50c] sm:$0xf] }
 0x154   :  { %v4357_v37 = vld [vmem:[#allocation4 + $0x70c] sm:$0xf] }
 0x155   :  { %2401 = vmatpush.bf16.msrb.mxu0 %v3578_v52  ;;  %2415 = vmatpush.bf16.msrb.mxu1 %v3706_v53  ;;  %v3783_v52 = vld [vmem:[#allocation4 + $0x678] sm:$0xf0]  ;;  %v4369_v53 = vld [vmem:[#allocation4 + $0x76c] sm:$0xf]  ;;  %v2129_v11 = vpop.f32.mrf.mxu0 }
 0x156   :  { %2380 = vmatmul.bf16.vlgmr.msra.gmra.mxu2 %v4615_v50  ;;  %2394 = vmatmul.bf16.vlgmr.msra.gmra.mxu3 %v4617_v51  ;;  %v4687_v50 = vpop.f32.mrf.mxu3  ;;  %v3799_v51 = vld [vmem:[#allocation4 + $0x698] sm:$0xf0]  ;;  %v3786_v1 = vor.u32 %v4337_v48, %v3783_v52  ;;  %v3914_v2 = vor.u32 %v4369_v53, %v3911_v57  ;;  %v4394_v52 = vld [vmem:[#allocation6 + $0x30] sm:$0xff]  ;;  %v2032_v57 = vadd.f32 %v4661_v55, %v4659_v29  ;;  %v4392_v29 = vld [vmem:[#allocation6 + $0x20] sm:$0xff] }
 0x157   :  { %2428 = vmatpush.bf16.msrb.mxu2 %v3850_v61  ;;  %2442 = vmatpush.bf16.msrb.mxu3 %v3978_v62  ;;  %v3802_v44 = vor.u32 %v4341_v32, %v3799_v51  ;;  %v4265_v61 = vld [vmem:[#allocation4 + $0x42c] sm:$0xf]  ;;  %v3495_v62 = vld [vmem:[#allocation4 + $0x438] sm:$0xf0]  ;;  %v4402_v53 = vld [vmem:[#allocation6 + $0x70] sm:$0xff] }
 0x158   :  { %v4325_v51 = vld [vmem:[#allocation4 + $0x60c] sm:$0xf]  ;;  %v4400_v55 = vld [vmem:[#allocation6 + $0x60] sm:$0xff] }
 0x159   :  { %2402 = vmatpush.bf16.msrb.mxu0 %v3562_v7  ;;  %2416 = vmatpush.bf16.msrb.mxu1 %v3690_v10  ;;  %v4365_v7 = vld [vmem:[#allocation4 + $0x74c] sm:$0xf]  ;;  %v3895_v10 = vld [vmem:[#allocation4 + $0x758] sm:$0xf0]  ;;  %v2157_v47 = vpop.f32.mrf.mxu2 }
 0x15a   :  { %v3898_v18 = vor.u32 %v4365_v7, %v3895_v10 }
 0x15b   :  { %2429 = vmatpush.bf16.msrb.mxu2 %v3834_v8  ;;  %2443 = vmatpush.bf16.msrb.mxu3 %v3962_v9  ;;  %v3498_v9 = vor.u32 %v4265_v61, %v3495_v62  ;;  %v2046_v61 = vadd.f32 %v4665_v63, %v2032_v57 }
 0x15d   :  { %2403 = vmatpush.bf16.msrb.mxu0 %v3546_v20  ;;  %2417 = vmatpush.bf16.msrb.mxu1 %v3674_v23  ;;  %v3607_v20 = vld [vmem:[#allocation4 + $0x518] sm:$0xf0]  ;;  %v4329_v23 = vld [vmem:[#allocation4 + $0x62c] sm:$0xf]  ;;  %v2060_v35 = vadd.f32 %v4667_v0, %v2046_v61  ;;  %v4390_v0 = vld [vmem:[#allocation6 + $0x10] sm:$0xff] }
 0x15e   :  { %v4693_v8 = vpop.f32.mrf.mxu3  ;;  %v3610_v30 = vor.u32 %v4293_v19, %v3607_v20  ;;  %v3754_v31 = vor.u32 %v4329_v23, %v3751_v24 }
 0x15f   :  { %2430 = vmatpush.bf16.msrb.mxu2 %v3818_v27  ;;  %2444 = vmatpush.bf16.msrb.mxu3 %v3946_v28  ;;  %v3879_v27 = vld [vmem:[#allocation4 + $0x738] sm:$0xf0]  ;;  %v3482_v28 = vor.u32 %v4261_v14, %v3479_v15  ;;  %v2074_v7 = vadd.f32 %v4671_v49, %v2060_v35  ;;  %v2464_v49 = vld [vmem:[#allocation1 + $0x9] sm:$0xff] }
 0x160   :  { %v3882_v32 = vor.u32 %v4361_v25, %v3879_v27  ;;  %v4389_v27 = vld [vmem:[#allocation6 + $0x8] sm:$0xff] }
 0x161   :  { %2404 = vmatpush.bf16.msrb.mxu0 %v3530_v40  ;;  %2418 = vmatpush.bf16.msrb.mxu1 %v3658_v41  ;;  %v2143_v40 = vpop.f32.mrf.mxu1  ;;  %v3863_v41 = vld [vmem:[#allocation4 + $0x718] sm:$0xf0]  ;;  %v2159_v63 = vpop.f32.mrf.mxu2 }
 0x162   :  { %v3866_v46 = vor.u32 %v4357_v37, %v3863_v41  ;;  %v2144_v62 = vadd.f32 %v2143_v40, %v2129_v11  ;;  %v4396_v40 = vld [vmem:[#allocation6 + $0x40] sm:$0xff] }
 0x163   :  { %2431 = vmatpush.bf16.msrb.mxu2 %v3802_v44  ;;  %2445 = vmatpush.bf16.msrb.mxu3 %v3930_v45  ;;  %v2131_v44 = vpop.f32.mrf.mxu0  ;;  %v3738_v45 = vor.u32 %v4325_v51, %v3735_v36 }
 0x165   :  { %2405 = vmatpush.bf16.msrb.mxu0 %v3514_v59  ;;  %2419 = vmatpush.bf16.msrb.mxu1 %v3642_v60  ;;  %v4393_v59 = vld [vmem:[#allocation6 + $0x28] sm:$0xff] }
 0x166   :  { %v2171_v48 = vpop.f32.mrf.mxu3  ;;  %v4401_v60 = vld [vmem:[#allocation6 + $0x68] sm:$0xff] }
 0x167   :  { %2432 = vmatpush.bf16.msrb.mxu2 %v3786_v1  ;;  %2446 = vmatpush.bf16.msrb.mxu3 %v3914_v2 }
 0x169   :  { %2406 = vmatpush.bf16.msrb.mxu0 %v3498_v9  ;;  %2420 = vmatpush.bf16.msrb.mxu1 %v3626_v13  ;;  %v2145_v1 = vpop.f32.mrf.mxu1  ;;  %v4398_v13 = vld [vmem:[#allocation6 + $0x50] sm:$0xff] }
 0x16a   :  { %v2146_v10 = vadd.f32 %v2145_v1, %v2131_v44 }
 0x16b   :  { %2433 = vmatpush.bf16.msrb.mxu2 %v3770_v17  ;;  %2447 = vmatpush.bf16.msrb.mxu3 %v3898_v18  ;;  %v2463_v17 = vld [vmem:[#allocation1] sm:$0xff] }
 0x16c   :  { %v2160_v9 = vadd.f32 %v2159_v63, %v2146_v10  ;;  %v2467_v25 = vpack.i.b16 %v2463_v17, %v2463_v17  ;;  %v4417_v17 = vld [vmem:[#allocation6 + $0xe8] sm:$0xff] }
 0x16d   :  { %2407 = vmatpush.bf16.msrb.mxu0 %v3482_v28  ;;  %2421 = vmatpush.bf16.msrb.mxu1 %v3610_v30  ;;  %v2185_v2 = vpop.f32.mrf.mxu0  ;;  %v4397_v28 = vld [vmem:[#allocation6 + $0x48] sm:$0xff] }
 0x16e   :  { %v2173_v21 = vpop.f32.mrf.mxu3  ;;  %v2469_v37 = vperm.slane %v2467_v25, 0  ;;  %v4415_v25 = vld [vmem:[#allocation6 + $0xd8] sm:$0xff] }
 0x16f   :  { %2434 = vmatpush.bf16.msrb.mxu2 %v3754_v31  ;;  %2448 = vmatpush.bf16.msrb.mxu3 %v3882_v32  ;;  %v2174_v24 = vadd.f32 %v2173_v21, %v2160_v9 }
 0x170   :  { %2408 = vmatmul.bf16.vlgmr.msrb.gmra.mxu0 %v4627_v38  ;;  %2422 = vmatmul.bf16.vlgmr.msrb.gmra.mxu1 %v4629_v39  ;;  %v2158_v38 = vadd.f32 %v2157_v47, %v2144_v62  ;;  %v2034_v39 = vadd.f32 %v4669_v34, %v4663_v22  ;;  %v2487_v47 = vunpack.c.l.bf16 %v2469_v37 }
 0x171   :  { %2783 = vmatpush.bf16.msra.mxu0 %v4395_v42  ;;  %2797 = vmatpush.bf16.msra.mxu1 %v4403_v43  ;;  %v2199_v34 = vpop.f32.mrf.mxu1 }
 0x172   :  { %v2048_v3 = vadd.f32 %v4673_v54, %v2034_v39  ;;  %v2172_v6 = vadd.f32 %v2171_v48, %v2158_v38  ;;  %v2088_v54 = vadd.f32 %v4679_v16, %v2074_v7  ;;  %v2470_v16 = vpack.i.b16 %v2464_v49, %v2464_v49  ;;  %v4416_v49 = vld [vmem:[#allocation6 + $0xe0] sm:$0xff] }
 0x173   :  { %2435 = vmatpush.bf16.msrb.mxu2 %v3738_v45  ;;  %2449 = vmatpush.bf16.msrb.mxu3 %v3866_v46 }
 0x174   :  { %v2186_v11 = vadd.f32 %v2185_v2, %v2172_v6  ;;  %v2062_v22 = vadd.f32 %v4675_v56, %v2048_v3  ;;  %v2102_v23 = vadd.f32 %v4685_v33, %v2088_v54  ;;  %v4388_v33 = vld [vmem:[#allocation6] sm:$0xff]  ;;  %v2472_v43 = vperm.slane %v2470_v16, 0 }
 0x175   :  { %2784 = vmatpush.bf16.msra.mxu0 %v4394_v52  ;;  %2798 = vmatpush.bf16.msra.mxu1 %v4402_v53  ;;  %v2187_v15 = vpop.f32.mrf.mxu0 }
 0x176   :  { %2436 = vmatmul.bf16.vlgmr.msrb.gmra.mxu2 %v4637_v4  ;;  %2450 = vmatmul.bf16.vlgmr.msrb.gmra.mxu3 %v4639_v5  ;;  %v4391_v4 = vld [vmem:[#allocation6 + $0x18] sm:$0xff]  ;;  %v2200_v14 = vadd.f32 %v2199_v34, %v2186_v11  ;;  %v2076_v18 = vadd.f32 %v4683_v26, %v2062_v22  ;;  %v2188_v30 = vadd.f32 %v2187_v15, %v2174_v24  ;;  %v4409_v15 = vld [vmem:[#allocation6 + $0xa8] sm:$0xff] }
 0x177   :  { %v4399_v5 = vld [vmem:[#allocation6 + $0x58] sm:$0xff]  ;;  %v2116_v51 = vadd.f32 %v4687_v50, %v2102_v23 }
 0x178   :  { %v2090_v32 = vadd.f32 %v4689_v58, %v2076_v18  ;;  %v4411_v11 = vld [vmem:[#allocation6 + $0xb8] sm:$0xff] }
 0x179   :  { %2785 = vmatpush.bf16.msra.mxu0 %v4393_v59  ;;  %2799 = vmatpush.bf16.msra.mxu1 %v4401_v60  ;;  %v2213_v19 = vpop.f32.mrf.mxu2  ;;  %v2227_v20 = vpop.f32.mrf.mxu3  ;;  %v4419_v22 = vld [vmem:[#allocation6 + $0xf8] sm:$0xff] }
 0x17a   :  { %v2214_v56 = vadd.f32 %v2213_v19, %v2200_v14  ;;  %v2104_v26 = vadd.f32 %v4691_v12, %v2090_v32  ;;  %v2201_v36 = vpop.f32.mrf.mxu1  ;;  %v2488_v12 = vunpack.c.l.bf16 %v2472_v43  ;;  %2811 = vmatpush.bf16.msra.mxu2 %v4411_v11  ;;  %2825 = vmatpush.bf16.msra.mxu3 %v4419_v22 }
 0x17b   :  { %v2202_v41 = vadd.f32 %v2201_v36, %v2188_v30  ;;  %v4414_v30 = vld [vmem:[#allocation6 + $0xd0] sm:$0xff] }
 0x17c   :  { %v2228_v31 = vadd.f32 %v2227_v20, %v2214_v56  ;;  %v2118_v46 = vadd.f32 %v4693_v8, %v2104_v26  ;;  %v4408_v20 = vld [vmem:[#allocation6 + $0xa0] sm:$0xff]  ;;  %v4407_v56 = vld [vmem:[#allocation6 + $0x98] sm:$0xff]  ;;  %v4413_v26 = vld [vmem:[#allocation6 + $0xc8] sm:$0xff] }
 0x17d   :  { %2786 = vmatpush.bf16.msra.mxu0 %v4392_v29  ;;  %2800 = vmatpush.bf16.msra.mxu1 %v4400_v55 }
 0x17e   :  { %v2456_v42 = vpack.c.bf16 %v2228_v31, %v2116_v51  ;;  %v4405_v51 = vld [vmem:[#allocation6 + $0x88] sm:$0xff] }
 0x180   :  { %v2479_v50 = vunpack.c.l.bf16 %v2456_v42  ;;  %v2480_v58 = vunpack.c.h.bf16 %v2456_v42 }
 0x181   :  { %2787 = vmatpush.bf16.msra.mxu0 %v4391_v4  ;;  %2801 = vmatpush.bf16.msra.mxu1 %v4399_v5  ;;  %v2215_v44 = vpop.f32.mrf.mxu2  ;;  %v2229_v48 = vpop.f32.mrf.mxu3 }
 0x182   :  { %v2216_v45 = vadd.f32 %v2215_v44, %v2202_v41  ;;  %v2491_v57 = vadd.f32 %v2487_v47, %v2479_v50  ;;  %v2492_v59 = vadd.f32 %v2488_v12, %v2480_v58 }
 0x184   :  { %v2230_v52 = vadd.f32 %v2229_v48, %v2216_v45  ;;  %v2511_v38 = vmax.f32 %v2491_v57, 0.0  ;;  %v2512_v2 = vmax.f32 %v2492_v59, 0.0 }
 0x185   :  { %2788 = vmatpush.bf16.msra.mxu0 %v4390_v0  ;;  %2802 = vmatpush.bf16.msra.mxu1 %v4398_v13  ;;  %v4410_v0 = vld [vmem:[#allocation6 + $0xb0] sm:$0xff] }
 0x186   :  { %v2458_v53 = vpack.c.bf16 %v2230_v52, %v2118_v46  ;;  %v4418_v13 = vld [vmem:[#allocation6 + $0xf0] sm:$0xff]  ;;  %2812 = vmatpush.bf16.msra.mxu2 %v4410_v0 }
 0x187   :  { %2826 = vmatpush.bf16.msra.mxu3 %v4418_v13 }
 0x188   :  { %v2483_v60 = vunpack.c.l.bf16 %v2458_v53  ;;  %v2484_v61 = vunpack.c.h.bf16 %v2458_v53 }
 0x189   :  { %2789 = vmatpush.bf16.msra.mxu0 %v4389_v27  ;;  %2803 = vmatpush.bf16.msra.mxu1 %v4397_v28  ;;  %v4406_v28 = vld [vmem:[#allocation6 + $0x90] sm:$0xff] }
 0x18a   :  { %v2495_v62 = vadd.f32 %v2487_v47, %v2483_v60  ;;  %v2496_v1 = vadd.f32 %v2488_v12, %v2484_v61  ;;  %2813 = vmatpush.bf16.msra.mxu2 %v4409_v15 }
 0x18b   :  { %2827 = vmatpush.bf16.msra.mxu3 %v4417_v17 }
 0x18c   :  { %v2515_v39 = vmax.f32 %v2495_v62, 0.0  ;;  %v2516_v29 = vmax.f32 %v2496_v1, 0.0 }
 0x18d   :  { %2790 = vmatpush.bf16.msra.mxu0 %v4388_v33  ;;  %2804 = vmatpush.bf16.msra.mxu1 %v4396_v40  ;;  %v2241_v35 = vpop.f32.mrf.mxu0  ;;  %v2255_v3 = vpop.f32.mrf.mxu1  ;;  %v4404_v33 = vld [vmem:[#allocation6 + $0x80] sm:$0xff] }
 0x18e   :  { %v2519_v8 = vpack.c.bf16 %v2515_v39, %v2511_v38  ;;  %v2520_v55 = vpack.c.bf16 %v2516_v29, %v2512_v2  ;;  %2814 = vmatpush.bf16.msra.mxu2 %v4408_v20  ;;  %v2256_v36 = vadd.f32 %v2255_v3, %v2241_v35  ;;  %v4412_v40 = vld [vmem:[#allocation6 + $0xc0] sm:$0xff]  ;;  %v2465_v38 = vld [vmem:[#allocation1 + $0x12] sm:$0xff] }
 0x18f   :  { %2828 = vmatpush.bf16.msra.mxu3 %v4416_v49 }
 0x190   :  { %2791 = vmatmul.bf16.vlgmr.msra.gmra.mxu0 %v2519_v8  ;;  %2805 = vmatmul.bf16.vlgmr.msra.gmra.mxu1 %v2520_v55  ;;  %v2466_v8 = vld [vmem:[#allocation1 + $0x1b] sm:$0xff] }
 0x192   :  { %2815 = vmatpush.bf16.msra.mxu2 %v4407_v56 }
 0x193   :  { %2829 = vmatpush.bf16.msra.mxu3 %v4415_v25 }
 0x195   :  { %v2243_v63 = vpop.f32.mrf.mxu0  ;;  %v2257_v4 = vpop.f32.mrf.mxu1 }
 0x196   :  { %2816 = vmatpush.bf16.msra.mxu2 %v4406_v28  ;;  %v2258_v45 = vadd.f32 %v2257_v4, %v2243_v63  ;;  %v2473_v63 = vpack.i.b16 %v2465_v38, %v2465_v38  ;;  %v2476_v4 = vpack.i.b16 %v2466_v8, %v2466_v8 }
 0x197   :  { %2830 = vmatpush.bf16.msra.mxu3 %v4414_v30 }
 0x198   :  { %v2475_v22 = vperm.slane %v2473_v63, 0  ;;  %v2478_v13 = vperm.slane %v2476_v4, 0 }
 0x199   :  { %v2269_v21 = vpop.f32.mrf.mxu2  ;;  %v2283_v6 = vpop.f32.mrf.mxu3 }
 0x19a   :  { %2817 = vmatpush.bf16.msra.mxu2 %v4405_v51  ;;  %v2270_v42 = vadd.f32 %v2269_v21, %v2256_v36  ;;  %v2490_v56 = vunpack.c.l.bf16 %v2478_v13 }
 0x19b   :  { %2831 = vmatpush.bf16.msra.mxu3 %v4413_v26 }
 0x19c   :  { %v2284_v48 = vadd.f32 %v2283_v6, %v2270_v42 }
 0x19e   :  { %2818 = vmatpush.bf16.msra.mxu2 %v4404_v33  ;;  %v4429_v33 = vld [vmem:[%s4736_s6] ss:$0 sm:$0xff] }
 0x19f   :  { %2832 = vmatpush.bf16.msra.mxu3 %v4412_v40 }
 0x1a1   :  { %v2271_v7 = vpop.f32.mrf.mxu2  ;;  %v2285_v10 = vpop.f32.mrf.mxu3 }
 0x1a2   :  { %v2272_v58 = vadd.f32 %v2271_v7, %v2258_v45 }
 0x1a4   :  { %v2286_v60 = vadd.f32 %v2285_v10, %v2272_v58 }
 0x1ad   :  { %v2297_v5 = vpop.f32.mrf.mxu0  ;;  %v2311_v34 = vpop.f32.mrf.mxu1 }
 0x1ae   :  { %v2298_v12 = vadd.f32 %v2297_v5, %v2284_v48 }
 0x1b0   :  { %v2312_v61 = vadd.f32 %v2311_v34, %v2298_v12 }
 0x1b5   :  { %v2299_v9 = vpop.f32.mrf.mxu0  ;;  %v2313_v18 = vpop.f32.mrf.mxu1 }
 0x1b6   :  { %v2300_v2 = vadd.f32 %v2299_v9, %v2286_v60 }
 0x1b8   :  { %v2314_v5 = vadd.f32 %v2313_v18, %v2300_v2 }
 0x1b9   :  { %v2325_v54 = vpop.f32.mrf.mxu2  ;;  %v4715_v14 = vpop.f32.mrf.mxu3 }
 0x1ba   :  { %v2326_v55 = vadd.f32 %v2325_v54, %v2312_v61  ;;  %v2489_v54 = vunpack.c.l.bf16 %v2475_v22 }
 0x1bc   :  { %v2340_v7 = vadd.f32 %v4715_v14, %v2326_v55 }
 0x1c1   :  { %v2327_v23 = vpop.f32.mrf.mxu2  ;;  %v4717_v24 = vpop.f32.mrf.mxu3 }
 0x1c2   :  { %v2328_v11 = vadd.f32 %v2327_v23, %v2314_v5 }
 0x1c4   :  { %v2342_v17 = vadd.f32 %v4717_v24, %v2328_v11 }
 0x1cd   :  { %v2353_v19 = vpop.f32.mrf.mxu0  ;;  %v2367_v27 = vpop.f32.mrf.mxu1 }
 0x1ce   :  { %v2368_v37 = vadd.f32 %v2367_v27, %v2353_v19 }
 0x1d5   :  { %v2355_v31 = vpop.f32.mrf.mxu0  ;;  %v2369_v41 = vpop.f32.mrf.mxu1 }
 0x1d6   :  { %v2370_v52 = vadd.f32 %v2369_v41, %v2355_v31 }
 0x1d9   :  { %v2381_v16 = vpop.f32.mrf.mxu2  ;;  %v2395_v32 = vpop.f32.mrf.mxu3 }
 0x1da   :  { %v2382_v43 = vadd.f32 %v2381_v16, %v2368_v37 }
 0x1dc   :  { %v2396_v50 = vadd.f32 %v2395_v32, %v2382_v43 }
 0x1e1   :  { %v2383_v46 = vpop.f32.mrf.mxu2  ;;  %v2397_v47 = vpop.f32.mrf.mxu3 }
 0x1e2   :  { %v2384_v59 = vadd.f32 %v2383_v46, %v2370_v52 }
 0x1e4   :  { %v2398_v35 = vadd.f32 %v2397_v47, %v2384_v59 }
 0x1ed   :  { %v2409_v44 = vpop.f32.mrf.mxu0  ;;  %v2423_v57 = vpop.f32.mrf.mxu1 }
 0x1ee   :  { %v2410_v53 = vadd.f32 %v2409_v44, %v2396_v50 }
 0x1f0   :  { %v2424_v62 = vadd.f32 %v2423_v57, %v2410_v53 }
 0x1f5   :  { %v2411_v1 = vpop.f32.mrf.mxu0  ;;  %v2425_v10 = vpop.f32.mrf.mxu1 }
 0x1f6   :  { %v2412_v21 = vadd.f32 %v2411_v1, %v2398_v35 }
 0x1f8   :  { %v2426_v34 = vadd.f32 %v2425_v10, %v2412_v21 }
 0x1f9   :  { %v2437_v39 = vpop.f32.mrf.mxu2  ;;  %v2451_v29 = vpop.f32.mrf.mxu3 }
 0x1fa   :  { %v2438_v3 = vadd.f32 %v2437_v39, %v2424_v62 }
 0x1fc   :  { %v2452_v6 = vadd.f32 %v2451_v29, %v2438_v3 }
 0x1fe   :  { %v2457_v0 = vpack.c.bf16 %v2452_v6, %v2340_v7 }
 0x200   :  { %v2481_v20 = vunpack.c.l.bf16 %v2457_v0  ;;  %v2482_v49 = vunpack.c.h.bf16 %v2457_v0 }
 0x201   :  { %v2439_v9 = vpop.f32.mrf.mxu2  ;;  %v2453_v19 = vpop.f32.mrf.mxu3 }
 0x202   :  { %v2440_v15 = vadd.f32 %v2439_v9, %v2426_v34  ;;  %v2493_v18 = vadd.f32 %v2489_v54, %v2481_v20  ;;  %v2494_v28 = vadd.f32 %v2490_v56, %v2482_v49 }
 0x204   :  { %v2454_v25 = vadd.f32 %v2453_v19, %v2440_v15  ;;  %v2513_v16 = vmax.f32 %v2493_v18, 0.0  ;;  %v2514_v32 = vmax.f32 %v2494_v28, 0.0 }
 0x206   :  { %v2459_v27 = vpack.c.bf16 %v2454_v25, %v2342_v17 }
 0x208   :  { %v2485_v14 = vunpack.c.l.bf16 %v2459_v27  ;;  %v2486_v23 = vunpack.c.h.bf16 %v2459_v27 }
 0x20a   :  { %v2497_v30 = vadd.f32 %v2489_v54, %v2485_v14  ;;  %v2498_v31 = vadd.f32 %v2490_v56, %v2486_v23 }
 0x20c   :  { %v2517_v51 = vmax.f32 %v2497_v30, 0.0  ;;  %v2518_v26 = vmax.f32 %v2498_v31, 0.0 }
 0x20d   :  { %v2792_v24 = vpop.f32.mrf.mxu0  ;;  %v2806_v41 = vpop.f32.mrf.mxu1 }
 0x20e   :  { %v2521_v36 = vpack.c.bf16 %v2517_v51, %v2513_v16  ;;  %v2522_v37 = vpack.c.bf16 %v2518_v26, %v2514_v32  ;;  %v2793_v40 = vadd.f32 %v4429_v33, %v2792_v24 }
 0x210   :  { %2819 = vmatmul.bf16.vlgmr.msra.gmra.mxu2 %v2521_v36  ;;  %2833 = vmatmul.bf16.vlgmr.msra.gmra.mxu3 %v2522_v37  ;;  %v2807_v42 = vadd.f32 %v2806_v41, %v2793_v40 }
 0x215   :  { %v2794_v43 = vpop.f32.mrf.mxu0  ;;  %v2808_v50 = vpop.f32.mrf.mxu1 }
 0x216   :  { %v2795_v47 = vadd.f32 %v4429_v33, %v2794_v43 }
 0x218   :  { %v2809_v58 = vadd.f32 %v2808_v50, %v2795_v47 }
 0x293   :  { %v2820_v44 = vpop.f32.mrf.mxu2  ;;  %v2834_v45 = vpop.f32.mrf.mxu3 }
 0x294   :  { %v2821_v46 = vadd.f32 %v2820_v44, %v2807_v42 }
 0x296   :  { %v2835_v48 = vadd.f32 %v2834_v45, %v2821_v46 }
 0x298   :  { %2839 = vst [vmem:[%s4737_s7] sm:$0xff] %v2835_v48 }
 0x29b   :  { %v2822_v12 = vpop.f32.mrf.mxu2  ;;  %v2836_v53 = vpop.f32.mrf.mxu3 }
 0x29c   :  { %v2823_v52 = vadd.f32 %v2822_v12, %v2809_v58 }
 0x29e   :  { %v2837_v57 = vadd.f32 %v2836_v53, %v2823_v52 }
 0x2a0   :  { %2840 = vst [vmem:[%s4737_s7 + $0x8] sm:$0xff] %v2837_v57 }
 0x2a1   :  { %2845 = vsyncpa [#allocation3], 1 }
 0x2a2   :  { %2846 = vsyncpa [#allocation5], 1 }

</bundles_post_ra>
